<compile_context>
chip_gen: v7x
topology: tpu7x:2x2x1
jax: 0.10.0
libtpu: 0.0.40
codegen_flags: <defaults>
</compile_context>

<pallas_src>
import functools

import jax
import jax.numpy as jnp
from jax import lax
from jax.experimental import pallas as pl
from jax.experimental.pallas import tpu as pltpu


def _round_up(x, k):
    return ((x + k - 1) // k) * k


def _cross_attn_kernel(x_ref, ctx_ref, wq_ref, wkv_ref, wo_ref, bo_ref, o_ref,
                       *, heads, dim_head_pad):
    bt, n, d = x_ref.shape
    m = ctx_ref.shape[1]
    inner_pad = heads * dim_head_pad

    # Cast activations to bf16 once (MXU-native input format); accumulation
    # stays in f32 via preferred_element_type.
    x = x_ref[...].reshape(bt * n, d).astype(jnp.bfloat16)       # (Bt*N, D)
    ctx = ctx_ref[...].reshape(bt * m, d).astype(jnp.bfloat16)   # (Bt*M, D)
    wq = wq_ref[...]      # (D, inner_pad)    bf16, softmax scale folded in
    wkv = wkv_ref[...]    # (D, 2*inner_pad)  bf16, [Wk | Wv], padded cols zero
    wo = wo_ref[...]      # (inner_pad, D)    bf16, padded rows zero
    bo = bo_ref[...]      # (1, D)            f32

    # Wide, lane-dense projections covering the whole batch block.
    q = jnp.dot(x, wq, preferred_element_type=jnp.float32)       # (Bt*N, inner_pad)
    kv = jnp.dot(ctx, wkv, preferred_element_type=jnp.float32)   # (Bt*M, 2*inner_pad)

    # Static loops: bt and heads are small compile-time constants.
    # (If heads grows beyond ~4, switch to lax.fori_loop(..., unroll=True).)
    out_rows = []
    for b in range(bt):
        head_cols = []
        for h in range(heads):
            lo = h * dim_head_pad            # 128-lane aligned slice starts
            hi = lo + dim_head_pad
            qh = q[b * n:(b + 1) * n, lo:hi].astype(jnp.bfloat16)        # (N, Dp)
            kh = kv[b * m:(b + 1) * m, lo:hi].astype(jnp.bfloat16)       # (M, Dp)
            vh = kv[b * m:(b + 1) * m,
                    inner_pad + lo:inner_pad + hi].astype(jnp.bfloat16)  # (M, Dp)

            # scores = qh @ kh^T with the transpose folded into the MXU
            # contraction (no materialized k.T).  Padded lanes are zero on
            # both sides, so they contribute nothing.
            s = lax.dot_general(qh, kh, (((1,), (1,)), ((), ())),
                                preferred_element_type=jnp.float32)      # (N, M)
            s = s - jnp.max(s, axis=-1, keepdims=True)
            p = jnp.exp(s)
            attn = p * pl.reciprocal(jnp.sum(p, axis=-1, keepdims=True),
                                     approx=True)                        # EUP slot
            head_cols.append(jnp.dot(attn.astype(jnp.bfloat16), vh,
                                     preferred_element_type=jnp.float32))  # (N, Dp)
        out_rows.append(jnp.concatenate(head_cols, axis=-1))     # (N, inner_pad)

    out_all = jnp.concatenate(out_rows, axis=0)                  # (Bt*N, inner_pad)

    # One deep output projection (K = inner_pad) instead of per-head drains;
    # padded Wo rows are zero so the result is exact.
    proj = jnp.dot(out_all.astype(jnp.bfloat16), wo,
                   preferred_element_type=jnp.float32) + bo      # (Bt*N, D)

    for b in range(bt):
        o_ref[b] = proj[b * n:(b + 1) * n, :].astype(o_ref.dtype)


def prepare_params(params, *, heads, dim_head, weight_dtype=jnp.bfloat16):
    """One-time parameter prep (hoisted out of the per-call path).

    PyTorch Linear stores weight as (out_features, in_features) and computes
    y = x @ W^T, so we transpose here.  The softmax scale is folded into Wq.
    Each head's dim_head block is zero-padded to a 128-lane boundary so that
    all per-head slices inside the kernel are lane-aligned (the zero padding
    is exact: padded Wq/Wk/Wv columns and Wo rows are zero).
    """
    D = params["wq"].shape[1]
    dim_head_pad = _round_up(dim_head, 128)
    scale = dim_head ** (-0.5)

    def pad_cols(w_t):  # (D, heads*dim_head) -> (D, heads*dim_head_pad)
        w = w_t.reshape(D, heads, dim_head)
        w = jnp.pad(w, ((0, 0), (0, 0), (0, dim_head_pad - dim_head)))
        return w.reshape(D, heads * dim_head_pad)

    wq = pad_cols(params["wq"].T * scale)                          # (D, inner_pad)
    wk = pad_cols(params["wk"].T)
    wv = pad_cols(params["wv"].T)
    wkv = jnp.concatenate([wk, wv], axis=1)                        # (D, 2*inner_pad)

    wo = params["wo"].T.reshape(heads, dim_head, D)                # (H, Dh, D)
    wo = jnp.pad(wo, ((0, 0), (0, dim_head_pad - dim_head), (0, 0)))
    wo = wo.reshape(heads * dim_head_pad, D)                       # (inner_pad, D)

    bo = params["bo"].reshape(1, D).astype(jnp.float32)

    return {"wq": wq.astype(weight_dtype),
            "wkv": wkv.astype(weight_dtype),
            "wo": wo.astype(weight_dtype),
            "bo": bo}


def _pick_batch_block(B):
    """Whole batch per step on single-TC chips (v5e/v6e); split across the two
    TensorCores on v7x."""
    try:
        kind = jax.devices()[0].device_kind.lower()
    except Exception:
        kind = ""
    if "v7" in kind and B % 2 == 0 and B >= 2:
        return B // 2
    return B


def cross_attention(x, context, prepped, *, heads, dim_head, batch_block=None):
    """x: (B, N, D), context: (B, M, D). Returns (B, N, D)."""
    B, N, D = x.shape
    _, M, _ = context.shape
    dim_head_pad = _round_up(dim_head, 128)
    inner_pad = heads * dim_head_pad

    if batch_block is None:
        batch_block = _pick_batch_block(B)
    if B % batch_block != 0:
        raise ValueError(f"batch_block={batch_block} must divide B={B}")
    num_steps = B // batch_block

    kernel = functools.partial(_cross_attn_kernel,
                               heads=heads, dim_head_pad=dim_head_pad)

    out = pl.pallas_call(
        kernel,
        out_shape=jax.ShapeDtypeStruct((B, N, D), x.dtype),
        grid_spec=pltpu.PrefetchScalarGridSpec(
            num_scalar_prefetch=0,
            grid=(num_steps,),
            in_specs=[
                pl.BlockSpec((batch_block, N, D), lambda g: (g, 0, 0)),   # x
                pl.BlockSpec((batch_block, M, D), lambda g: (g, 0, 0)),   # context
                pl.BlockSpec((D, inner_pad), lambda g: (0, 0)),           # Wq (scaled, padded)
                pl.BlockSpec((D, 2 * inner_pad), lambda g: (0, 0)),       # [Wk | Wv] (padded)
                pl.BlockSpec((inner_pad, D), lambda g: (0, 0)),           # Wo (padded rows)
                pl.BlockSpec((1, D), lambda g: (0, 0)),                   # out bias
            ],
            out_specs=pl.BlockSpec((batch_block, N, D), lambda g: (g, 0, 0)),
        ),
        compiler_params=pltpu.CompilerParams(
            dimension_semantics=("parallel",)),
    )(x, context, prepped["wq"], prepped["wkv"], prepped["wo"], prepped["bo"])
    return out


def cross_attention_ref(x, context, params, *, heads, dim_head):
    """Pure-JAX f32 reference mirroring the PyTorch forward (dropout in eval mode)."""
    B, N, D = x.shape
    M = context.shape[1]
    scale = dim_head ** (-0.5)
    q = (x @ params["wq"].T).reshape(B, N, heads, dim_head).transpose(0, 2, 1, 3)
    k = (context @ params["wk"].T).reshape(B, M, heads, dim_head).transpose(0, 2, 1, 3)
    v = (context @ params["wv"].T).reshape(B, M, heads, dim_head).transpose(0, 2, 1, 3)
    scores = jnp.einsum("bhnd,bhmd->bhnm", q, k) * scale
    attn = jax.nn.softmax(scores, axis=-1)
    out = jnp.einsum("bhnm,bhmd->bhnd", attn, v)
    out = out.transpose(0, 2, 1, 3).reshape(B, N, heads * dim_head)
    return out @ params["wo"].T + params["bo"]


if __name__ == "__main__":
    # Small shapes consistent with the module: dim=32, heads=4, dim_head=64.
    B, N, M, D = 2, 16, 8, 32
    HEADS, DIM_HEAD = 4, 64
    INNER = HEADS * DIM_HEAD

    key = jax.random.PRNGKey(0)
    kx, kc, k1, k2, k3, k4, k5 = jax.random.split(key, 7)

    x = jax.random.normal(kx, (B, N, D), dtype=jnp.float32)
    context = jax.random.normal(kc, (B, M, D), dtype=jnp.float32)

    # Deterministic parameter init (PyTorch Linear weight layout: (out, in)).
    params = {
        "wq": 0.05 * jax.random.normal(k1, (INNER, D), dtype=jnp.float32),
        "wk": 0.05 * jax.random.normal(k2, (INNER, D), dtype=jnp.float32),
        "wv": 0.05 * jax.random.normal(k3, (INNER, D), dtype=jnp.float32),
        "wo": 0.05 * jax.random.normal(k4, (D, INNER), dtype=jnp.float32),
        "bo": 0.05 * jax.random.normal(k5, (D,), dtype=jnp.float32),
    }

    # One-time param prep (transpose / concat / scale fold / 128-lane head
    # padding / bf16 cast), hoisted out of the call path.
    prepped = prepare_params(params, heads=HEADS, dim_head=DIM_HEAD)
    prepped = jax.tree_util.tree_map(lambda a: a.block_until_ready(), prepped)

    out = cross_attention(x, context, prepped, heads=HEADS, dim_head=DIM_HEAD)
    out = jax.block_until_ready(out)

    ref = cross_attention_ref(x, context, params, heads=HEADS, dim_head=DIM_HEAD)
    assert out.shape == (B, N, D)
    # Tolerance 1e-2: bf16 MXU inputs (f32 accumulation) plus the EUP
    # approximate reciprocal in the softmax denominator.
    assert jnp.allclose(out, ref, atol=1e-2, rtol=1e-2), "mismatch vs reference"

    print("KERNEL_OK")
</pallas_src>

<mosaic_0001>
module attributes {stable_mosaic.version = 11 : i64} {
  func.func @_cross_attn_kernel(%arg0: i32, %arg1: memref<2x16x32xf32, #tpu.memory_space<vmem>>, %arg2: memref<2x8x32xf32, #tpu.memory_space<vmem>>, %arg3: memref<32x512xbf16, #tpu.memory_space<vmem>>, %arg4: memref<32x1024xbf16, #tpu.memory_space<vmem>>, %arg5: memref<512x32xbf16, #tpu.memory_space<vmem>>, %arg6: memref<1x32xf32, #tpu.memory_space<vmem>>, %arg7: memref<2x16x32xf32, #tpu.memory_space<vmem>>) attributes {dimension_semantics = [#tpu.dimension_semantics<parallel>], iteration_bounds = array<i64: 1>, scalar_prefetch = 0 : i64, scratch_operands = 0 : i64, tpu.core_type = #tpu.core_type<tc>, window_params = [{transform_indices = @transform_0, window_bounds = array<i64: 2, 16, 32>}, {transform_indices = @transform_1, window_bounds = array<i64: 2, 8, 32>}, {pipeline_mode = #tpu.pipeline_mode<synchronous>, transform_indices = @transform_2, window_bounds = array<i64: 32, 512>}, {pipeline_mode = #tpu.pipeline_mode<synchronous>, transform_indices = @transform_3, window_bounds = array<i64: 32, 1024>}, {pipeline_mode = #tpu.pipeline_mode<synchronous>, transform_indices = @transform_4, window_bounds = array<i64: 512, 32>}, {pipeline_mode = #tpu.pipeline_mode<synchronous>, transform_indices = @transform_5, window_bounds = array<i64: 1, 32>}, {transform_indices = @transform_6, window_bounds = array<i64: 2, 16, 32>}]} {
    %c0 = arith.constant 0 : index
    %c0_0 = arith.constant 0 : index
    %c0_1 = arith.constant 0 : index
    %0 = vector.load %arg1[%c0, %c0_0, %c0_1] : memref<2x16x32xf32, #tpu.memory_space<vmem>>, vector<2x16x32xf32>
    %1 = vector.shape_cast %0 : vector<2x16x32xf32> to vector<32x32xf32>
    %2 = arith.truncf %1 : vector<32x32xf32> to vector<32x32xbf16>
    %c0_2 = arith.constant 0 : index
    %c0_3 = arith.constant 0 : index
    %c0_4 = arith.constant 0 : index
    %3 = vector.load %arg2[%c0_2, %c0_3, %c0_4] : memref<2x8x32xf32, #tpu.memory_space<vmem>>, vector<2x8x32xf32>
    %4 = vector.shape_cast %3 : vector<2x8x32xf32> to vector<16x32xf32>
    %5 = arith.truncf %4 : vector<16x32xf32> to vector<16x32xbf16>
    %c0_5 = arith.constant 0 : index
    %c0_6 = arith.constant 0 : index
    %6 = vector.load %arg3[%c0_5, %c0_6] : memref<32x512xbf16, #tpu.memory_space<vmem>>, vector<32x512xbf16>
    %c0_7 = arith.constant 0 : index
    %c0_8 = arith.constant 0 : index
    %7 = vector.load %arg4[%c0_7, %c0_8] : memref<32x1024xbf16, #tpu.memory_space<vmem>>, vector<32x1024xbf16>
    %c0_9 = arith.constant 0 : index
    %c0_10 = arith.constant 0 : index
    %8 = vector.load %arg5[%c0_9, %c0_10] : memref<512x32xbf16, #tpu.memory_space<vmem>>, vector<512x32xbf16>
    %c0_11 = arith.constant 0 : index
    %c0_12 = arith.constant 0 : index
    %9 = vector.load %arg6[%c0_11, %c0_12] : memref<1x32xf32, #tpu.memory_space<vmem>>, vector<1x32xf32>
    %cst = arith.constant dense<0.000000e+00> : vector<32x512xf32>
    %10 = tpu.matmul %2, %6, %cst {dimension_numbers = #tpu.dot_dimension_numbers<[1], [0], [0], [1], [0, 0, 1, 1], [], []>} : vector<32x32xbf16>, vector<32x512xbf16>, vector<32x512xf32> -> vector<32x512xf32>
    %cst_13 = arith.constant dense<0.000000e+00> : vector<16x1024xf32>
    %11 = tpu.matmul %5, %7, %cst_13 {dimension_numbers = #tpu.dot_dimension_numbers<[1], [0], [0], [1], [0, 0, 1, 1], [], []>} : vector<16x32xbf16>, vector<32x1024xbf16>, vector<16x1024xf32> -> vector<16x1024xf32>
    %12 = vector.extract_strided_slice %10 {offsets = [0, 0], sizes = [16, 128], strides = [1, 1]} : vector<32x512xf32> to vector<16x128xf32>
    %13 = arith.truncf %12 : vector<16x128xf32> to vector<16x128xbf16>
    %14 = vector.extract_strided_slice %11 {offsets = [0, 0], sizes = [8, 128], strides = [1, 1]} : vector<16x1024xf32> to vector<8x128xf32>
    %15 = arith.truncf %14 : vector<8x128xf32> to vector<8x128xbf16>
    %16 = vector.extract_strided_slice %11 {offsets = [0, 512], sizes = [8, 128], strides = [1, 1]} : vector<16x1024xf32> to vector<8x128xf32>
    %17 = arith.truncf %16 : vector<8x128xf32> to vector<8x128xbf16>
    %cst_14 = arith.constant dense<0.000000e+00> : vector<16x8xf32>
    %18 = tpu.matmul %13, %15, %cst_14 {dimension_numbers = #tpu.dot_dimension_numbers<[1], [1], [0], [0], [0, 0, 1, 0], [], []>} : vector<16x128xbf16>, vector<8x128xbf16>, vector<16x8xf32> -> vector<16x8xf32>
    %cst_15 = arith.constant dense<0xFF800000> : vector<16xf32>
    %19 = vector.multi_reduction <maximumf>, %18, %cst_15 [1] : vector<16x8xf32> to vector<16xf32>
    %20 = vector.shape_cast %19 : vector<16xf32> to vector<16x1xf32>
    %21 = vector.broadcast %20 : vector<16x1xf32> to vector<16x8xf32>
    %22 = arith.subf %18, %21 : vector<16x8xf32>
    %23 = math.exp %22 : vector<16x8xf32>
    %cst_16 = arith.constant dense<0.000000e+00> : vector<16xf32>
    %24 = vector.multi_reduction <add>, %23, %cst_16 [1] : vector<16x8xf32> to vector<16xf32>
    %25 = vector.shape_cast %24 : vector<16xf32> to vector<16x1xf32>
    %26 = tpu.reciprocal %25 {approx = true} : vector<16x1xf32> -> vector<16x1xf32>
    %27 = vector.broadcast %26 : vector<16x1xf32> to vector<16x8xf32>
    %28 = arith.mulf %23, %27 : vector<16x8xf32>
    %29 = arith.truncf %28 : vector<16x8xf32> to vector<16x8xbf16>
    %cst_17 = arith.constant dense<0.000000e+00> : vector<16x128xf32>
    %30 = tpu.matmul %29, %17, %cst_17 {dimension_numbers = #tpu.dot_dimension_numbers<[1], [0], [0], [1], [0, 0, 1, 1], [], []>} : vector<16x8xbf16>, vector<8x128xbf16>, vector<16x128xf32> -> vector<16x128xf32>
    %31 = vector.extract_strided_slice %10 {offsets = [0, 128], sizes = [16, 128], strides = [1, 1]} : vector<32x512xf32> to vector<16x128xf32>
    %32 = arith.truncf %31 : vector<16x128xf32> to vector<16x128xbf16>
    %33 = vector.extract_strided_slice %11 {offsets = [0, 128], sizes = [8, 128], strides = [1, 1]} : vector<16x1024xf32> to vector<8x128xf32>
    %34 = arith.truncf %33 : vector<8x128xf32> to vector<8x128xbf16>
    %35 = vector.extract_strided_slice %11 {offsets = [0, 640], sizes = [8, 128], strides = [1, 1]} : vector<16x1024xf32> to vector<8x128xf32>
    %36 = arith.truncf %35 : vector<8x128xf32> to vector<8x128xbf16>
    %cst_18 = arith.constant dense<0.000000e+00> : vector<16x8xf32>
    %37 = tpu.matmul %32, %34, %cst_18 {dimension_numbers = #tpu.dot_dimension_numbers<[1], [1], [0], [0], [0, 0, 1, 0], [], []>} : vector<16x128xbf16>, vector<8x128xbf16>, vector<16x8xf32> -> vector<16x8xf32>
    %cst_19 = arith.constant dense<0xFF800000> : vector<16xf32>
    %38 = vector.multi_reduction <maximumf>, %37, %cst_19 [1] : vector<16x8xf32> to vector<16xf32>
    %39 = vector.shape_cast %38 : vector<16xf32> to vector<16x1xf32>
    %40 = vector.broadcast %39 : vector<16x1xf32> to vector<16x8xf32>
    %41 = arith.subf %37, %40 : vector<16x8xf32>
    %42 = math.exp %41 : vector<16x8xf32>
    %cst_20 = arith.constant dense<0.000000e+00> : vector<16xf32>
    %43 = vector.multi_reduction <add>, %42, %cst_20 [1] : vector<16x8xf32> to vector<16xf32>
    %44 = vector.shape_cast %43 : vector<16xf32> to vector<16x1xf32>
    %45 = tpu.reciprocal %44 {approx = true} : vector<16x1xf32> -> vector<16x1xf32>
    %46 = vector.broadcast %45 : vector<16x1xf32> to vector<16x8xf32>
    %47 = arith.mulf %42, %46 : vector<16x8xf32>
    %48 = arith.truncf %47 : vector<16x8xf32> to vector<16x8xbf16>
    %cst_21 = arith.constant dense<0.000000e+00> : vector<16x128xf32>
    %49 = tpu.matmul %48, %36, %cst_21 {dimension_numbers = #tpu.dot_dimension_numbers<[1], [0], [0], [1], [0, 0, 1, 1], [], []>} : vector<16x8xbf16>, vector<8x128xbf16>, vector<16x128xf32> -> vector<16x128xf32>
    %50 = vector.extract_strided_slice %10 {offsets = [0, 256], sizes = [16, 128], strides = [1, 1]} : vector<32x512xf32> to vector<16x128xf32>
    %51 = arith.truncf %50 : vector<16x128xf32> to vector<16x128xbf16>
    %52 = vector.extract_strided_slice %11 {offsets = [0, 256], sizes = [8, 128], strides = [1, 1]} : vector<16x1024xf32> to vector<8x128xf32>
    %53 = arith.truncf %52 : vector<8x128xf32> to vector<8x128xbf16>
    %54 = vector.extract_strided_slice %11 {offsets = [0, 768], sizes = [8, 128], strides = [1, 1]} : vector<16x1024xf32> to vector<8x128xf32>
    %55 = arith.truncf %54 : vector<8x128xf32> to vector<8x128xbf16>
    %cst_22 = arith.constant dense<0.000000e+00> : vector<16x8xf32>
    %56 = tpu.matmul %51, %53, %cst_22 {dimension_numbers = #tpu.dot_dimension_numbers<[1], [1], [0], [0], [0, 0, 1, 0], [], []>} : vector<16x128xbf16>, vector<8x128xbf16>, vector<16x8xf32> -> vector<16x8xf32>
    %cst_23 = arith.constant dense<0xFF800000> : vector<16xf32>
    %57 = vector.multi_reduction <maximumf>, %56, %cst_23 [1] : vector<16x8xf32> to vector<16xf32>
    %58 = vector.shape_cast %57 : vector<16xf32> to vector<16x1xf32>
    %59 = vector.broadcast %58 : vector<16x1xf32> to vector<16x8xf32>
    %60 = arith.subf %56, %59 : vector<16x8xf32>
    %61 = math.exp %60 : vector<16x8xf32>
    %cst_24 = arith.constant dense<0.000000e+00> : vector<16xf32>
    %62 = vector.multi_reduction <add>, %61, %cst_24 [1] : vector<16x8xf32> to vector<16xf32>
    %63 = vector.shape_cast %62 : vector<16xf32> to vector<16x1xf32>
    %64 = tpu.reciprocal %63 {approx = true} : vector<16x1xf32> -> vector<16x1xf32>
    %65 = vector.broadcast %64 : vector<16x1xf32> to vector<16x8xf32>
    %66 = arith.mulf %61, %65 : vector<16x8xf32>
    %67 = arith.truncf %66 : vector<16x8xf32> to vector<16x8xbf16>
    %cst_25 = arith.constant dense<0.000000e+00> : vector<16x128xf32>
    %68 = tpu.matmul %67, %55, %cst_25 {dimension_numbers = #tpu.dot_dimension_numbers<[1], [0], [0], [1], [0, 0, 1, 1], [], []>} : vector<16x8xbf16>, vector<8x128xbf16>, vector<16x128xf32> -> vector<16x128xf32>
    %69 = vector.extract_strided_slice %10 {offsets = [0, 384], sizes = [16, 128], strides = [1, 1]} : vector<32x512xf32> to vector<16x128xf32>
    %70 = arith.truncf %69 : vector<16x128xf32> to vector<16x128xbf16>
    %71 = vector.extract_strided_slice %11 {offsets = [0, 384], sizes = [8, 128], strides = [1, 1]} : vector<16x1024xf32> to vector<8x128xf32>
    %72 = arith.truncf %71 : vector<8x128xf32> to vector<8x128xbf16>
    %73 = vector.extract_strided_slice %11 {offsets = [0, 896], sizes = [8, 128], strides = [1, 1]} : vector<16x1024xf32> to vector<8x128xf32>
    %74 = arith.truncf %73 : vector<8x128xf32> to vector<8x128xbf16>
    %cst_26 = arith.constant dense<0.000000e+00> : vector<16x8xf32>
    %75 = tpu.matmul %70, %72, %cst_26 {dimension_numbers = #tpu.dot_dimension_numbers<[1], [1], [0], [0], [0, 0, 1, 0], [], []>} : vector<16x128xbf16>, vector<8x128xbf16>, vector<16x8xf32> -> vector<16x8xf32>
    %cst_27 = arith.constant dense<0xFF800000> : vector<16xf32>
    %76 = vector.multi_reduction <maximumf>, %75, %cst_27 [1] : vector<16x8xf32> to vector<16xf32>
    %77 = vector.shape_cast %76 : vector<16xf32> to vector<16x1xf32>
    %78 = vector.broadcast %77 : vector<16x1xf32> to vector<16x8xf32>
    %79 = arith.subf %75, %78 : vector<16x8xf32>
    %80 = math.exp %79 : vector<16x8xf32>
    %cst_28 = arith.constant dense<0.000000e+00> : vector<16xf32>
    %81 = vector.multi_reduction <add>, %80, %cst_28 [1] : vector<16x8xf32> to vector<16xf32>
    %82 = vector.shape_cast %81 : vector<16xf32> to vector<16x1xf32>
    %83 = tpu.reciprocal %82 {approx = true} : vector<16x1xf32> -> vector<16x1xf32>
    %84 = vector.broadcast %83 : vector<16x1xf32> to vector<16x8xf32>
    %85 = arith.mulf %80, %84 : vector<16x8xf32>
    %86 = arith.truncf %85 : vector<16x8xf32> to vector<16x8xbf16>
    %cst_29 = arith.constant dense<0.000000e+00> : vector<16x128xf32>
    %87 = tpu.matmul %86, %74, %cst_29 {dimension_numbers = #tpu.dot_dimension_numbers<[1], [0], [0], [1], [0, 0, 1, 1], [], []>} : vector<16x8xbf16>, vector<8x128xbf16>, vector<16x128xf32> -> vector<16x128xf32>
    %88 = tpu.concatenate %30, %49, %68, %87 in 1 : vector<16x128xf32>, vector<16x128xf32>, vector<16x128xf32>, vector<16x128xf32> -> vector<16x512xf32>
    %89 = vector.extract_strided_slice %10 {offsets = [16, 0], sizes = [16, 128], strides = [1, 1]} : vector<32x512xf32> to vector<16x128xf32>
    %90 = arith.truncf %89 : vector<16x128xf32> to vector<16x128xbf16>
    %91 = vector.extract_strided_slice %11 {offsets = [8, 0], sizes = [8, 128], strides = [1, 1]} : vector<16x1024xf32> to vector<8x128xf32>
    %92 = arith.truncf %91 : vector<8x128xf32> to vector<8x128xbf16>
    %93 = vector.extract_strided_slice %11 {offsets = [8, 512], sizes = [8, 128], strides = [1, 1]} : vector<16x1024xf32> to vector<8x128xf32>
    %94 = arith.truncf %93 : vector<8x128xf32> to vector<8x128xbf16>
    %cst_30 = arith.constant dense<0.000000e+00> : vector<16x8xf32>
    %95 = tpu.matmul %90, %92, %cst_30 {dimension_numbers = #tpu.dot_dimension_numbers<[1], [1], [0], [0], [0, 0, 1, 0], [], []>} : vector<16x128xbf16>, vector<8x128xbf16>, vector<16x8xf32> -> vector<16x8xf32>
    %cst_31 = arith.constant dense<0xFF800000> : vector<16xf32>
    %96 = vector.multi_reduction <maximumf>, %95, %cst_31 [1] : vector<16x8xf32> to vector<16xf32>
    %97 = vector.shape_cast %96 : vector<16xf32> to vector<16x1xf32>
    %98 = vector.broadcast %97 : vector<16x1xf32> to vector<16x8xf32>
    %99 = arith.subf %95, %98 : vector<16x8xf32>
    %100 = math.exp %99 : vector<16x8xf32>
    %cst_32 = arith.constant dense<0.000000e+00> : vector<16xf32>
    %101 = vector.multi_reduction <add>, %100, %cst_32 [1] : vector<16x8xf32> to vector<16xf32>
    %102 = vector.shape_cast %101 : vector<16xf32> to vector<16x1xf32>
    %103 = tpu.reciprocal %102 {approx = true} : vector<16x1xf32> -> vector<16x1xf32>
    %104 = vector.broadcast %103 : vector<16x1xf32> to vector<16x8xf32>
    %105 = arith.mulf %100, %104 : vector<16x8xf32>
    %106 = arith.truncf %105 : vector<16x8xf32> to vector<16x8xbf16>
    %cst_33 = arith.constant dense<0.000000e+00> : vector<16x128xf32>
    %107 = tpu.matmul %106, %94, %cst_33 {dimension_numbers = #tpu.dot_dimension_numbers<[1], [0], [0], [1], [0, 0, 1, 1], [], []>} : vector<16x8xbf16>, vector<8x128xbf16>, vector<16x128xf32> -> vector<16x128xf32>
    %108 = vector.extract_strided_slice %10 {offsets = [16, 128], sizes = [16, 128], strides = [1, 1]} : vector<32x512xf32> to vector<16x128xf32>
    %109 = arith.truncf %108 : vector<16x128xf32> to vector<16x128xbf16>
    %110 = vector.extract_strided_slice %11 {offsets = [8, 128], sizes = [8, 128], strides = [1, 1]} : vector<16x1024xf32> to vector<8x128xf32>
    %111 = arith.truncf %110 : vector<8x128xf32> to vector<8x128xbf16>
    %112 = vector.extract_strided_slice %11 {offsets = [8, 640], sizes = [8, 128], strides = [1, 1]} : vector<16x1024xf32> to vector<8x128xf32>
    %113 = arith.truncf %112 : vector<8x128xf32> to vector<8x128xbf16>
    %cst_34 = arith.constant dense<0.000000e+00> : vector<16x8xf32>
    %114 = tpu.matmul %109, %111, %cst_34 {dimension_numbers = #tpu.dot_dimension_numbers<[1], [1], [0], [0], [0, 0, 1, 0], [], []>} : vector<16x128xbf16>, vector<8x128xbf16>, vector<16x8xf32> -> vector<16x8xf32>
    %cst_35 = arith.constant dense<0xFF800000> : vector<16xf32>
    %115 = vector.multi_reduction <maximumf>, %114, %cst_35 [1] : vector<16x8xf32> to vector<16xf32>
    %116 = vector.shape_cast %115 : vector<16xf32> to vector<16x1xf32>
    %117 = vector.broadcast %116 : vector<16x1xf32> to vector<16x8xf32>
    %118 = arith.subf %114, %117 : vector<16x8xf32>
    %119 = math.exp %118 : vector<16x8xf32>
    %cst_36 = arith.constant dense<0.000000e+00> : vector<16xf32>
    %120 = vector.multi_reduction <add>, %119, %cst_36 [1] : vector<16x8xf32> to vector<16xf32>
    %121 = vector.shape_cast %120 : vector<16xf32> to vector<16x1xf32>
    %122 = tpu.reciprocal %121 {approx = true} : vector<16x1xf32> -> vector<16x1xf32>
    %123 = vector.broadcast %122 : vector<16x1xf32> to vector<16x8xf32>
    %124 = arith.mulf %119, %123 : vector<16x8xf32>
    %125 = arith.truncf %124 : vector<16x8xf32> to vector<16x8xbf16>
    %cst_37 = arith.constant dense<0.000000e+00> : vector<16x128xf32>
    %126 = tpu.matmul %125, %113, %cst_37 {dimension_numbers = #tpu.dot_dimension_numbers<[1], [0], [0], [1], [0, 0, 1, 1], [], []>} : vector<16x8xbf16>, vector<8x128xbf16>, vector<16x128xf32> -> vector<16x128xf32>
    %127 = vector.extract_strided_slice %10 {offsets = [16, 256], sizes = [16, 128], strides = [1, 1]} : vector<32x512xf32> to vector<16x128xf32>
    %128 = arith.truncf %127 : vector<16x128xf32> to vector<16x128xbf16>
    %129 = vector.extract_strided_slice %11 {offsets = [8, 256], sizes = [8, 128], strides = [1, 1]} : vector<16x1024xf32> to vector<8x128xf32>
    %130 = arith.truncf %129 : vector<8x128xf32> to vector<8x128xbf16>
    %131 = vector.extract_strided_slice %11 {offsets = [8, 768], sizes = [8, 128], strides = [1, 1]} : vector<16x1024xf32> to vector<8x128xf32>
    %132 = arith.truncf %131 : vector<8x128xf32> to vector<8x128xbf16>
    %cst_38 = arith.constant dense<0.000000e+00> : vector<16x8xf32>
    %133 = tpu.matmul %128, %130, %cst_38 {dimension_numbers = #tpu.dot_dimension_numbers<[1], [1], [0], [0], [0, 0, 1, 0], [], []>} : vector<16x128xbf16>, vector<8x128xbf16>, vector<16x8xf32> -> vector<16x8xf32>
    %cst_39 = arith.constant dense<0xFF800000> : vector<16xf32>
    %134 = vector.multi_reduction <maximumf>, %133, %cst_39 [1] : vector<16x8xf32> to vector<16xf32>
    %135 = vector.shape_cast %134 : vector<16xf32> to vector<16x1xf32>
    %136 = vector.broadcast %135 : vector<16x1xf32> to vector<16x8xf32>
    %137 = arith.subf %133, %136 : vector<16x8xf32>
    %138 = math.exp %137 : vector<16x8xf32>
    %cst_40 = arith.constant dense<0.000000e+00> : vector<16xf32>
    %139 = vector.multi_reduction <add>, %138, %cst_40 [1] : vector<16x8xf32> to vector<16xf32>
    %140 = vector.shape_cast %139 : vector<16xf32> to vector<16x1xf32>
    %141 = tpu.reciprocal %140 {approx = true} : vector<16x1xf32> -> vector<16x1xf32>
    %142 = vector.broadcast %141 : vector<16x1xf32> to vector<16x8xf32>
    %143 = arith.mulf %138, %142 : vector<16x8xf32>
    %144 = arith.truncf %143 : vector<16x8xf32> to vector<16x8xbf16>
    %cst_41 = arith.constant dense<0.000000e+00> : vector<16x128xf32>
    %145 = tpu.matmul %144, %132, %cst_41 {dimension_numbers = #tpu.dot_dimension_numbers<[1], [0], [0], [1], [0, 0, 1, 1], [], []>} : vector<16x8xbf16>, vector<8x128xbf16>, vector<16x128xf32> -> vector<16x128xf32>
    %146 = vector.extract_strided_slice %10 {offsets = [16, 384], sizes = [16, 128], strides = [1, 1]} : vector<32x512xf32> to vector<16x128xf32>
    %147 = arith.truncf %146 : vector<16x128xf32> to vector<16x128xbf16>
    %148 = vector.extract_strided_slice %11 {offsets = [8, 384], sizes = [8, 128], strides = [1, 1]} : vector<16x1024xf32> to vector<8x128xf32>
    %149 = arith.truncf %148 : vector<8x128xf32> to vector<8x128xbf16>
    %150 = vector.extract_strided_slice %11 {offsets = [8, 896], sizes = [8, 128], strides = [1, 1]} : vector<16x1024xf32> to vector<8x128xf32>
    %151 = arith.truncf %150 : vector<8x128xf32> to vector<8x128xbf16>
    %cst_42 = arith.constant dense<0.000000e+00> : vector<16x8xf32>
    %152 = tpu.matmul %147, %149, %cst_42 {dimension_numbers = #tpu.dot_dimension_numbers<[1], [1], [0], [0], [0, 0, 1, 0], [], []>} : vector<16x128xbf16>, vector<8x128xbf16>, vector<16x8xf32> -> vector<16x8xf32>
    %cst_43 = arith.constant dense<0xFF800000> : vector<16xf32>
    %153 = vector.multi_reduction <maximumf>, %152, %cst_43 [1] : vector<16x8xf32> to vector<16xf32>
    %154 = vector.shape_cast %153 : vector<16xf32> to vector<16x1xf32>
    %155 = vector.broadcast %154 : vector<16x1xf32> to vector<16x8xf32>
    %156 = arith.subf %152, %155 : vector<16x8xf32>
    %157 = math.exp %156 : vector<16x8xf32>
    %cst_44 = arith.constant dense<0.000000e+00> : vector<16xf32>
    %158 = vector.multi_reduction <add>, %157, %cst_44 [1] : vector<16x8xf32> to vector<16xf32>
    %159 = vector.shape_cast %158 : vector<16xf32> to vector<16x1xf32>
    %160 = tpu.reciprocal %159 {approx = true} : vector<16x1xf32> -> vector<16x1xf32>
    %161 = vector.broadcast %160 : vector<16x1xf32> to vector<16x8xf32>
    %162 = arith.mulf %157, %161 : vector<16x8xf32>
    %163 = arith.truncf %162 : vector<16x8xf32> to vector<16x8xbf16>
    %cst_45 = arith.constant dense<0.000000e+00> : vector<16x128xf32>
    %164 = tpu.matmul %163, %151, %cst_45 {dimension_numbers = #tpu.dot_dimension_numbers<[1], [0], [0], [1], [0, 0, 1, 1], [], []>} : vector<16x8xbf16>, vector<8x128xbf16>, vector<16x128xf32> -> vector<16x128xf32>
    %165 = tpu.concatenate %107, %126, %145, %164 in 1 : vector<16x128xf32>, vector<16x128xf32>, vector<16x128xf32>, vector<16x128xf32> -> vector<16x512xf32>
    %166 = tpu.concatenate %88, %165 in 0 : vector<16x512xf32>, vector<16x512xf32> -> vector<32x512xf32>
    %167 = arith.truncf %166 : vector<32x512xf32> to vector<32x512xbf16>
    %cst_46 = arith.constant dense<0.000000e+00> : vector<32x32xf32>
    %168 = tpu.matmul %167, %8, %cst_46 {dimension_numbers = #tpu.dot_dimension_numbers<[1], [0], [0], [1], [0, 0, 1, 1], [], []>} : vector<32x512xbf16>, vector<512x32xbf16>, vector<32x32xf32> -> vector<32x32xf32>
    %169 = vector.broadcast %9 : vector<1x32xf32> to vector<32x32xf32>
    %170 = arith.addf %168, %169 : vector<32x32xf32>
    %171 = vector.extract_strided_slice %170 {offsets = [0, 0], sizes = [16, 32], strides = [1, 1]} : vector<32x32xf32> to vector<16x32xf32>
    %c0_47 = arith.constant 0 : index
    %c0_48 = arith.constant 0 : index
    %c0_49 = arith.constant 0 : index
    %172 = vector.load %arg7[%c0_47, %c0_48, %c0_49] : memref<2x16x32xf32, #tpu.memory_space<vmem>>, vector<1x16x32xf32>
    %173 = vector.shape_cast %172 : vector<1x16x32xf32> to vector<16x32xf32>
    %174 = vector.shape_cast %171 : vector<16x32xf32> to vector<1x16x32xf32>
    tpu.vector_store %arg7[%c0_47, %c0_48, %c0_49], %174 {strides = array<i32>} : memref<2x16x32xf32, #tpu.memory_space<vmem>>, vector<1x16x32xf32>,
    %175 = vector.extract_strided_slice %170 {offsets = [16, 0], sizes = [16, 32], strides = [1, 1]} : vector<32x32xf32> to vector<16x32xf32>
    %c1 = arith.constant 1 : index
    %c0_50 = arith.constant 0 : index
    %c0_51 = arith.constant 0 : index
    %176 = vector.load %arg7[%c1, %c0_50, %c0_51] : memref<2x16x32xf32, #tpu.memory_space<vmem>>, vector<1x16x32xf32>
    %177 = vector.shape_cast %176 : vector<1x16x32xf32> to vector<16x32xf32>
    %178 = vector.shape_cast %175 : vector<16x32xf32> to vector<1x16x32xf32>
    tpu.vector_store %arg7[%c1, %c0_50, %c0_51], %178 {strides = array<i32>} : memref<2x16x32xf32, #tpu.memory_space<vmem>>, vector<1x16x32xf32>,
    return
  }
  func.func @transform_0(%arg0: i32) -> (i32, i32, i32) {
    %c0_i32 = arith.constant 0 : i32
    %c0_i32_0 = arith.constant 0 : i32
    %c0_i32_1 = arith.constant 0 : i32
    return %arg0, %c0_i32, %c0_i32_0 : i32, i32, i32
  }
  func.func @transform_1(%arg0: i32) -> (i32, i32, i32) {
    %c0_i32 = arith.constant 0 : i32
    %c0_i32_0 = arith.constant 0 : i32
    %c0_i32_1 = arith.constant 0 : i32
    return %arg0, %c0_i32, %c0_i32_0 : i32, i32, i32
  }
  func.func @transform_2(%arg0: i32) -> (i32, i32) {
    %c0_i32 = arith.constant 0 : i32
    %c0_i32_0 = arith.constant 0 : i32
    %c0_i32_1 = arith.constant 0 : i32
    return %c0_i32, %c0_i32_0 : i32, i32
  }
  func.func @transform_3(%arg0: i32) -> (i32, i32) {
    %c0_i32 = arith.constant 0 : i32
    %c0_i32_0 = arith.constant 0 : i32
    %c0_i32_1 = arith.constant 0 : i32
    return %c0_i32, %c0_i32_0 : i32, i32
  }
  func.func @transform_4(%arg0: i32) -> (i32, i32) {
    %c0_i32 = arith.constant 0 : i32
    %c0_i32_0 = arith.constant 0 : i32
    %c0_i32_1 = arith.constant 0 : i32
    return %c0_i32, %c0_i32_0 : i32, i32
  }
  func.func @transform_5(%arg0: i32) -> (i32, i32) {
    %c0_i32 = arith.constant 0 : i32
    %c0_i32_0 = arith.constant 0 : i32
    %c0_i32_1 = arith.constant 0 : i32
    return %c0_i32, %c0_i32_0 : i32, i32
  }
  func.func @transform_6(%arg0: i32) -> (i32, i32, i32) {
    %c0_i32 = arith.constant 0 : i32
    %c0_i32_0 = arith.constant 0 : i32
    %c0_i32_1 = arith.constant 0 : i32
    return %arg0, %c0_i32, %c0_i32_0 : i32, i32, i32
  }
}

</mosaic_0001>

<bundles_post_ra>
// kernel: tpu_custom_call.1
= control target key start
LH: loop header
LB: loop body
LE: loop exit
PB: predicated region body
PF: predicated region fallthrough
CT: control target
= control target key end

     0   :  { %v2165_v2 = vmov 0   ;;  %vm163_vm0 = vcmask 261120   ;;  %s2671_s0 = inlined_call_operand.vmem [shape: f32[2,16,32], index: 0, kind: input, shape index: {}]   ;;  %s2672_s1 = inlined_call_operand.vmem [shape: f32[2,8,32], index: 1, kind: input, shape index: {}]   ;;  %s2673_s2 = inlined_call_operand.vmem [shape: bf16[32,512], index: 2, kind: input, shape index: {}]   ;;  %s2674_s3 = inlined_call_operand.vmem [shape: bf16[32,1024], index: 3, kind: input, shape index: {}]   ;;  %s2675_s4 = inlined_call_operand.vmem [shape: bf16[512,32], index: 4, kind: input, shape index: {}]   ;;  %s2676_s5 = inlined_call_operand.vmem [shape: f32[1,32], index: 5, kind: input, shape index: {}]   ;;  %s2677_s6 = inlined_call_operand.hbm [shape: f32[2,16,32], index: 6, kind: output, shape index: {}]  }
   0x1   :  { %v2033_v0 = vld [vmem:[%s2673_s2 + $0x4] ss:$16 sps:$4 sm:$0xff]   ;;  %v2035_v1 = vld [vmem:[%s2673_s2] ss:$16 sps:$4 sm:$0xff]   ;;  %202 = vmatprep.mubr.bf16.mxu0 %v2165_v2  ;;  %255 = vmatprep.mubr.bf16.mxu1 %v2165_v2  ;;  %v26_v6 = vld [vmem:[%s2671_s0 + $0x8] sm:$0xff] }
   0x2   :  { %170 = vmatprep.subr.bf16.mxu0 %v2033_v0  ;;  %v2036_v3 = vld [vmem:[%s2673_s2 + $0x24] ss:$16 sps:$4 sm:$0xff]   ;;  %v2038_v4 = vld [vmem:[%s2673_s2 + $0x20] ss:$16 sps:$4 sm:$0xff]   ;;  %v2039_v10 = vld [vmem:[%s2673_s2 + $0xc] ss:$16 sps:$4 sm:$0xff]  }
   0x3   :  { %v25_v5 = vld [vmem:[%s2671_s0] sm:$0xff]  ;;  %171 = vmatpush1.bf16.msra.mxu0 %v2035_v1  ;;  %v2041_v11 = vld [vmem:[%s2673_s2 + $0x8] ss:$16 sps:$4 sm:$0xff]   ;;  %223 = vmatprep.subr.bf16.mxu1 %v2039_v10  ;;  %v2042_v16 = vld [vmem:[%s2673_s2 + $0x2c] ss:$16 sps:$4 sm:$0xff]  }
   0x4   :  { %v42_v7 = vld [vmem:[%s2674_s3] sm:$0xff]  ;;  %172 = vmatprep.subr.bf16.mxu0 %v2036_v3  ;;  %v29_v12 = vpack.c.bf16 %v26_v6, %v25_v5  ;;  %224 = vmatpush1.bf16.msra.mxu1 %v2041_v11  ;;  %v2044_v18 = vld [vmem:[%s2673_s2 + $0x28] ss:$16 sps:$4 sm:$0xff]   ;;  %v27_v20 = vld [vmem:[%s2671_s0 + $0x10] sm:$0xff] }
   0x5   :  { %v46_v8 = vld [vmem:[%s2674_s3 + $0x20] sm:$0xff]  ;;  %v43_v19 = vld [vmem:[%s2674_s3 + $0x8] sm:$0xff]  ;;  %v28_v21 = vld [vmem:[%s2671_s0 + $0x18] sm:$0xff]  ;;  %225 = vmatprep.subr.bf16.mxu1 %v2042_v16 }
   0x6   :  { %v1783_v9 = vcombine.high %v42_v7, %v46_v8  ;;  %v50_v13 = vld [vmem:[%s2674_s3 + $0x40] sm:$0xff]  ;;  %v1782_v15 = vcombine.low %v42_v7, %v46_v8  ;;  %v47_v22 = vld [vmem:[%s2674_s3 + $0x28] sm:$0xff]  ;;  %v30_v29 = vpack.c.bf16 %v28_v21, %v27_v20 }
   0x7   :  { %v54_v14 = vld [vmem:[%s2674_s3 + $0x60] sm:$0xff]  ;;  %173 = vmatpush1.bf16.msra.mxu0 %v2038_v4  ;;  %v51_v23 = vld [vmem:[%s2674_s3 + $0x48] sm:$0xff]  ;;  %v1785_v25 = vcombine.high %v43_v19, %v47_v22  ;;  %v1784_v27 = vcombine.low %v43_v19, %v47_v22 }
   0x8   :  { %359 = vmatprep.subr.bf16.mxu0 %v1783_v9  ;;  %v1791_v17 = vcombine.high %v50_v13, %v54_v14  ;;  %v55_v24 = vld [vmem:[%s2674_s3 + $0x68] sm:$0xff]  ;;  %v1790_v26 = vcombine.low %v50_v13, %v54_v14  ;;  %226 = vmatpush1.bf16.msra.mxu1 %v2044_v18  ;;  %v31_v31 = vld [vmem:[%s2672_s1] sm:$0xff] }
   0x9   :  { %402 = vmatprep.subr.bf16.mxu1 %v1785_v25  ;;  %v1793_v28 = vcombine.high %v51_v23, %v55_v24  ;;  %v1792_v30 = vcombine.low %v51_v23, %v55_v24  ;;  %v32_v32 = vld [vmem:[%s2672_s1 + $0x8] sm:$0xff] }
   0xa   :  { %1778 = vmatmul.mubr.msk.bf16.vlgmr.msra.gmra.mrb[0].mxu0 %vm163_vm0, %v29_v12  ;;  %v33_v33 = vpack.c.bf16 %v32_v32, %v31_v31 }
   0xb   :  { %360 = vmatpush1.bf16.msra.mxu0 %v1782_v15  ;;  %212 = vmatprep.mubr.bf16.mxu0 %v2165_v2 }
   0xc   :  { %361 = vmatprep.subr.bf16.mxu0 %v1791_v17  ;;  %1780 = vmatmul.mubr.msk.bf16.vlgmr.msra.gmra.mrb[0].mxu1 %vm163_vm0, %v29_v12 }
   0xd   :  { %403 = vmatpush1.bf16.msra.mxu1 %v1784_v27  ;;  %265 = vmatprep.mubr.bf16.mxu1 %v2165_v2 }
   0xe   :  { %404 = vmatprep.subr.bf16.mxu1 %v1793_v28 }
   0xf   :  { %362 = vmatpush1.bf16.msra.mxu0 %v1790_v26 }
  0x11   :  { %405 = vmatpush1.bf16.msra.mxu1 %v1792_v30 }
  0x12   :  { %1779 = vmatmul.mubr.msk.bf16.gmra.mrb[4].mxu0 %vm163_vm0, %v30_v29 }
  0x13   :  { %391 = vmatprep.mubr.bf16.mxu0 %v2165_v2 }
  0x14   :  { %1781 = vmatmul.mubr.msk.bf16.gmra.mrb[4].mxu1 %vm163_vm0, %v30_v29 }
  0x15   :  { %434 = vmatprep.mubr.bf16.mxu1 %v2165_v2 }
  0x1a   :  { %1798 = vmatmul.mubr.msk.bf16.vlgmr.msra.gmra.mrb[8].mxu0 %vm163_vm0, %v33_v33 }
  0x1b   :  { %477 = vmatprep.mubr.bf16.mxu0 %v2165_v2 }
  0x1c   :  { %1799 = vmatmul.mubr.msk.bf16.vlgmr.msra.gmra.mrb[8].mxu1 %vm163_vm0, %v33_v33 }
  0x1d   :  { %11 = vsyncpa [#allocation3], 0  ;;  %520 = vmatprep.mubr.bf16.mxu1 %v2165_v2  ;;  %v44_v34 = vld [vmem:[%s2674_s3 + $0x10] sm:$0xff]  ;;  %v2166_v42 = vmov 0.0   ;;  %vm2167_vm1 = vmmov 0   ;;  %v45_v43 = vld [vmem:[%s2674_s3 + $0x18] sm:$0xff] }
  0x1e   :  { %v48_v35 = vld [vmem:[%s2674_s3 + $0x30] sm:$0xff]  ;;  %v49_v44 = vld [vmem:[%s2674_s3 + $0x38] sm:$0xff]  ;;  %vm602_vm2 = vcmask 1043456   ;;  %vm575_vm3 = vcmask 64512  }
  0x1f   :  { %v1787_v36 = vcombine.high %v44_v34, %v48_v35  ;;  %v1786_v37 = vcombine.low %v44_v34, %v48_v35  ;;  %v52_v38 = vld [vmem:[%s2674_s3 + $0x50] sm:$0xff]  ;;  %v1788_v45 = vcombine.low %v45_v43, %v49_v44  ;;  %v1789_v46 = vcombine.high %v45_v43, %v49_v44  ;;  %v53_v47 = vld [vmem:[%s2674_s3 + $0x58] sm:$0xff] }
  0x20   :  { %v56_v39 = vld [vmem:[%s2674_s3 + $0x70] sm:$0xff]  ;;  %v57_v48 = vld [vmem:[%s2674_s3 + $0x78] sm:$0xff] }
  0x21   :  { %445 = vmatprep.subr.bf16.mxu0 %v1787_v36  ;;  %v1795_v40 = vcombine.high %v52_v38, %v56_v39  ;;  %v1794_v41 = vcombine.low %v52_v38, %v56_v39  ;;  %488 = vmatprep.subr.bf16.mxu1 %v1789_v46  ;;  %v1796_v49 = vcombine.low %v53_v47, %v57_v48 }
  0x22   :  { %446 = vmatpush1.bf16.msra.mxu0 %v1786_v37  ;;  %489 = vmatpush1.bf16.msra.mxu1 %v1788_v45  ;;  %v1797_v50 = vcombine.high %v53_v47, %v57_v48 }
  0x23   :  { %447 = vmatprep.subr.bf16.mxu0 %v1795_v40 }
  0x24   :  { %490 = vmatprep.subr.bf16.mxu1 %v1797_v50 }
  0x26   :  { %448 = vmatpush1.bf16.msra.mxu0 %v1794_v41  ;;  %491 = vmatpush1.bf16.msra.mxu1 %v1796_v49 }
  0x27   :  { %1931 = vmatprep.subr.bf16.mxu0 %v2166_v42  ;;  %1937 = vmatprep.subr.bf16.mxu1 %v2166_v42 }
  0x29   :  { %1800 = vmatmul.mubr.msk.bf16.vlgmr.msra.gmra.mrb[12].mxu0 %vm163_vm0, %v33_v33  ;;  %1801 = vmatmul.mubr.msk.bf16.vlgmr.msra.gmra.mrb[12].mxu1 %vm163_vm0, %v33_v33 }
  0x2a   :  { %1933 = vmatprep.mubr.msk.bf16.mxu0 %vm2167_vm1, %v2166_v42  ;;  %1939 = vmatprep.mubr.msk.bf16.mxu1 %vm2167_vm1, %v2166_v42 }
  0xdd   :  { %v204_v51 = vpop.f32.mrb[0].mxu0 }
  0xde   :  { %v206_v52 = vpop.f32.mrb[1].mxu0 }
  0xdf   :  { %v208_v53 = vpop.f32.mrb[2].mxu0  ;;  %v257_v57 = vpop.f32.mrb[0].mxu1 }
  0xe0   :  { %v531_v54 = vpack.c.bf16 %v208_v53, %v204_v51  ;;  %v210_v55 = vpop.f32.mrb[3].mxu0  ;;  %v259_v58 = vpop.f32.mrb[1].mxu1 }
  0xe1   :  { %v647_v56 = vpack.c.bf16 %v210_v55, %v206_v52  ;;  %v261_v59 = vpop.f32.mrb[2].mxu1 }
  0xe2   :  { %v761_v61 = vpack.c.bf16 %v261_v59, %v257_v57  ;;  %v263_v62 = vpop.f32.mrb[3].mxu1 }
  0xe3   :  { %v875_v0 = vpack.c.bf16 %v263_v62, %v259_v58 }
  0xe5   :  { %v214_v60 = vpop.f32.mrb[4].mxu0 }
  0xe6   :  { %v216_v63 = vpop.f32.mrb[5].mxu0 }
  0xe7   :  { %v218_v1 = vpop.f32.mrb[6].mxu0  ;;  %v267_v5 = vpop.f32.mrb[4].mxu1 }
  0xe8   :  { %v989_v2 = vpack.c.bf16 %v218_v1, %v214_v60  ;;  %v220_v3 = vpop.f32.mrb[7].mxu0  ;;  %v269_v6 = vpop.f32.mrb[5].mxu1 }
  0xe9   :  { %v1103_v4 = vpack.c.bf16 %v220_v3, %v216_v63  ;;  %v271_v7 = vpop.f32.mrb[6].mxu1 }
  0xea   :  { %v1217_v9 = vpack.c.bf16 %v271_v7, %v267_v5  ;;  %v273_v10 = vpop.f32.mrb[7].mxu1 }
  0xeb   :  { %v1331_v13 = vpack.c.bf16 %v273_v10, %v269_v6 }
  0xed   :  { %v393_v8 = vpop.f32.mrb[8].mxu0 }
  0xee   :  { %v532_v11 = vpack.c.bf16 %v393_v8, %v393_v8  ;;  %v395_v12 = vpop.f32.mrb[9].mxu0 }
  0xef   :  { %v397_v14 = vpop.f32.mrb[10].mxu0  ;;  %v436_v16 = vpop.f32.mrb[8].mxu1  ;;  %v648_v20 = vpack.c.bf16 %v395_v12, %v395_v12 }
  0xf0   :  { %v399_v15 = vpop.f32.mrb[11].mxu0  ;;  %1932 = vmatpush3.bf16.xpose.msra.mxu0 %v532_v11  ;;  %v438_v17 = vpop.f32.mrb[9].mxu1  ;;  %v762_v21 = vpack.c.bf16 %v436_v16, %v436_v16  ;;  %v990_v23 = vpack.c.bf16 %v397_v14, %v397_v14 }
  0xf1   :  { %1943 = vmatprep.subr.bf16.mxu0 %v2166_v42  ;;  %v440_v18 = vpop.f32.mrb[10].mxu1  ;;  %v876_v22 = vpack.c.bf16 %v438_v17, %v438_v17  ;;  %v1104_v24 = vpack.c.bf16 %v399_v15, %v399_v15 }
  0xf2   :  { %v442_v19 = vpop.f32.mrb[11].mxu1  ;;  %v1218_v25 = vpack.c.bf16 %v440_v18, %v440_v18 }
  0xf3   :  { %v1332_v26 = vpack.c.bf16 %v442_v19, %v442_v19 }
  0xf7   :  { %1934 = vmatmul.mubr.bf16.vlgmr.msra.gmra.mrb[16].mxu0 %v531_v54 }
  0xf8   :  { %1944 = vmatpush3.bf16.xpose.msra.mxu0 %v648_v20  ;;  %1945 = vmatprep.mubr.msk.bf16.mxu0 %vm2167_vm1, %v2166_v42 }
  0xf9   :  { %1955 = vmatprep.subr.bf16.mxu0 %v2166_v42 }
  0xfc   :  { %v479_v27 = vpop.f32.mrb[12].mxu0 }
  0xfd   :  { %v533_v28 = vpack.c.bf16 %v479_v27, %v479_v27  ;;  %v2331_v29 = vpop.f32.mrb[13].mxu0 }
  0xfe   :  { %v2333_v30 = vpop.f32.mrb[14].mxu0 }
  0xff   :  { %1946 = vmatmul.mubr.bf16.vlgmr.msra.gmra.mrb[20].mxu0 %v647_v56  ;;  %v604_v31 = vsel %vm602_vm2, %v533_v28, 0  ;;  %v2336_v32 = vpop.f32.mrb[15].mxu0 }
 0x100   :  { %1956 = vmatpush3.bf16.xpose.msra.mxu0 %v762_v21  ;;  %1957 = vmatprep.mubr.msk.bf16.mxu0 %vm2167_vm1, %v2166_v42 }
 0x101   :  { %1967 = vmatprep.subr.bf16.mxu0 %v2166_v42  ;;  %1938 = vmatpush3.bf16.msra.mxu1 %v604_v31 }
 0x102   :  { %1949 = vmatprep.subr.bf16.mxu1 %v2166_v42 }
 0x107   :  { %1958 = vmatmul.mubr.bf16.vlgmr.msra.gmra.mrb[24].mxu0 %v761_v61 }
 0x108   :  { %1968 = vmatpush3.bf16.xpose.msra.mxu0 %v876_v22  ;;  %1969 = vmatprep.mubr.msk.bf16.mxu0 %vm2167_vm1, %v2166_v42 }
 0x109   :  { %1979 = vmatprep.subr.bf16.mxu0 %v2166_v42 }
 0x10f   :  { %1970 = vmatmul.mubr.bf16.vlgmr.msra.gmra.mrb[28].mxu0 %v875_v0 }
 0x110   :  { %1980 = vmatpush3.bf16.xpose.msra.mxu0 %v990_v23  ;;  %1981 = vmatprep.mubr.msk.bf16.mxu0 %vm2167_vm1, %v2166_v42 }
 0x111   :  { %1991 = vmatprep.subr.bf16.mxu0 %v2166_v42 }
 0x117   :  { %1982 = vmatmul.mubr.bf16.vlgmr.msra.gmra.mrb[32].mxu0 %v989_v2 }
 0x118   :  { %1992 = vmatpush3.bf16.xpose.msra.mxu0 %v1104_v24  ;;  %1993 = vmatprep.mubr.msk.bf16.mxu0 %vm2167_vm1, %v2166_v42 }
 0x119   :  { %2003 = vmatprep.subr.bf16.mxu0 %v2166_v42 }
 0x11f   :  { %1994 = vmatmul.mubr.bf16.vlgmr.msra.gmra.mrb[36].mxu0 %v1103_v4 }
 0x120   :  { %2004 = vmatpush3.bf16.xpose.msra.mxu0 %v1218_v25  ;;  %2005 = vmatprep.mubr.msk.bf16.mxu0 %vm2167_vm1, %v2166_v42 }
 0x121   :  { %2015 = vmatprep.subr.bf16.mxu0 %v2166_v42 }
 0x127   :  { %2006 = vmatmul.mubr.bf16.vlgmr.msra.gmra.mrb[40].mxu0 %v1217_v9 }
 0x128   :  { %2016 = vmatpush3.bf16.xpose.msra.mxu0 %v1332_v26  ;;  %2017 = vmatprep.mubr.msk.bf16.mxu0 %vm2167_vm1, %v2166_v42 }
 0x12f   :  { %2018 = vmatmul.mubr.bf16.vlgmr.msra.gmra.mrb[44].mxu0 %v1331_v13 }
 0x1ca   :  { %v2339_v33 = vpop.f32.mrb[16].mxu0 }
 0x1cb   :  { %v1935_v34 = vpop.f32.mrb[17].mxu0  ;;  %v576_v35 = vsel %vm575_vm3, %v2339_v33, -inf }
 0x1cc   :  { %577 = vmax.xlane.f32.xlu0 %v576_v35  ;;  %v2343_v36 = vpop.f32.mrb[18].mxu0 }
 0x1cd   :  { %v1936_v37 = vpop.f32.mrb[19].mxu0  ;;  %v579_v38 = vsel %vm575_vm3, %v2343_v36, -inf }
 0x1d0   :  { %580 = vmax.xlane.f32.xlu0 %v579_v38 }
 0x1d2   :  { %v2347_v39 = vpop.f32.mrb[20].mxu0 }
 0x1d3   :  { %v1947_v40 = vpop.f32.mrb[21].mxu0  ;;  %v691_v41 = vsel %vm575_vm3, %v2347_v39, -inf }
 0x1d4   :  { %692 = vmax.xlane.f32.xlu1 %v691_v41  ;;  %v2351_v43 = vpop.f32.mrb[22].mxu0 }
 0x1d5   :  { %v1948_v44 = vpop.f32.mrb[23].mxu0  ;;  %v694_v45 = vsel %vm575_vm3, %v2351_v43, -inf }
 0x1d8   :  { %695 = vmax.xlane.f32.xlu1 %v694_v45 }
 0x1da   :  { %v2355_v46 = vpop.f32.mrb[24].mxu0 }
 0x1db   :  { %v1959_v47 = vpop.f32.mrb[25].mxu0  ;;  %v805_v48 = vsel %vm575_vm3, %v2355_v46, -inf }
 0x1dc   :  { %806 = vmax.xlane.f32.xlu0 %v805_v48  ;;  %v2359_v49 = vpop.f32.mrb[26].mxu0 }
 0x1dd   :  { %v1960_v50 = vpop.f32.mrb[27].mxu0  ;;  %v808_v51 = vsel %vm575_vm3, %v2359_v49, -inf }
 0x1de   :  { %809 = vmax.xlane.f32.xlu1 %v808_v51 }
 0x1e2   :  { %v2363_v52 = vpop.f32.mrb[28].mxu0 }
 0x1e3   :  { %v1971_v53 = vpop.f32.mrb[29].mxu0  ;;  %v919_v54 = vsel %vm575_vm3, %v2363_v52, -inf }
 0x1e4   :  { %920 = vmax.xlane.f32.xlu0 %v919_v54  ;;  %v2367_v55 = vpop.f32.mrb[30].mxu0 }
 0x1e5   :  { %v1972_v56 = vpop.f32.mrb[31].mxu0  ;;  %v922_v57 = vsel %vm575_vm3, %v2367_v55, -inf }
 0x1e6   :  { %923 = vmax.xlane.f32.xlu1 %v922_v57 }
 0x1ea   :  { %v2371_v58 = vpop.f32.mrb[32].mxu0 }
 0x1eb   :  { %v1983_v59 = vpop.f32.mrb[33].mxu0  ;;  %v1033_v60 = vsel %vm575_vm3, %v2371_v58, -inf }
 0x1ec   :  { %1034 = vmax.xlane.f32.xlu0 %v1033_v60  ;;  %v2375_v61 = vpop.f32.mrb[34].mxu0 }
 0x1ed   :  { %v1984_v62 = vpop.f32.mrb[35].mxu0  ;;  %v1036_v63 = vsel %vm575_vm3, %v2375_v61, -inf }
 0x1ee   :  { %1037 = vmax.xlane.f32.xlu1 %v1036_v63 }
 0x1f2   :  { %v2379_v0 = vpop.f32.mrb[36].mxu0 }
 0x1f3   :  { %v1995_v1 = vpop.f32.mrb[37].mxu0  ;;  %v1147_v2 = vsel %vm575_vm3, %v2379_v0, -inf }
 0x1f4   :  { %1148 = vmax.xlane.f32.xlu0 %v1147_v2  ;;  %v2383_v3 = vpop.f32.mrb[38].mxu0 }
 0x1f5   :  { %v1996_v4 = vpop.f32.mrb[39].mxu0  ;;  %v1150_v5 = vsel %vm575_vm3, %v2383_v3, -inf }
 0x1f6   :  { %1151 = vmax.xlane.f32.xlu1 %v1150_v5 }
 0x1fa   :  { %v2387_v6 = vpop.f32.mrb[40].mxu0 }
 0x1fb   :  { %v2007_v7 = vpop.f32.mrb[41].mxu0  ;;  %v1261_v8 = vsel %vm575_vm3, %v2387_v6, -inf }
 0x1fc   :  { %1262 = vmax.xlane.f32.xlu0 %v1261_v8  ;;  %v2391_v9 = vpop.f32.mrb[42].mxu0 }
 0x1fd   :  { %v2008_v10 = vpop.f32.mrb[43].mxu0  ;;  %v1264_v11 = vsel %vm575_vm3, %v2391_v9, -inf }
 0x1fe   :  { %1265 = vmax.xlane.f32.xlu1 %v1264_v11 }
 0x202   :  { %v2395_v12 = vpop.f32.mrb[44].mxu0 }
 0x203   :  { %v2019_v13 = vpop.f32.mrb[45].mxu0  ;;  %v1375_v14 = vsel %vm575_vm3, %v2395_v12, -inf }
 0x204   :  { %1376 = vmax.xlane.f32.xlu0 %v1375_v14  ;;  %v2399_v15 = vpop.f32.mrb[46].mxu0 }
 0x205   :  { %v2020_v16 = vpop.f32.mrb[47].mxu0  ;;  %v1378_v17 = vsel %vm575_vm3, %v2399_v15, -inf }
 0x206   :  { %1379 = vmax.xlane.f32.xlu1 %v1378_v17 }
 0x259   :  { %v578_v18 = vpop.xlane.xlu0 %577 }
 0x25a   :  { %v582_v19 = vsub.f32 %v2339_v33, %v578_v18 }
 0x25c   :  { %v584_v20 = vmul.f32 1.442695, %v582_v19 }
 0x25d   :  { %v581_v21 = vpop.xlane.xlu0 %580 }
 0x25e   :  { %2077 = vpow2.f32 %v584_v20  ;;  %v583_v22 = vsub.f32 %v2343_v36, %v581_v21 }
 0x260   :  { %v586_v23 = vmul.f32 1.442695, %v583_v22 }
 0x261   :  { %v693_v24 = vpop.xlane.xlu1 %692 }
 0x262   :  { %2079 = vpow2.f32 %v586_v23  ;;  %v697_v25 = vsub.f32 %v2347_v39, %v693_v24 }
 0x264   :  { %v699_v26 = vmul.f32 1.442695, %v697_v25 }
 0x265   :  { %v696_v27 = vpop.xlane.xlu1 %695 }
 0x266   :  { %2081 = vpow2.f32 %v699_v26  ;;  %v698_v28 = vsub.f32 %v2351_v43, %v696_v27 }
 0x268   :  { %v2407_v31 = vpop.eup %2077  ;;  %v701_v34 = vmul.f32 1.442695, %v698_v28  ;;  %v2464_v28 = vpop.f32.mrb[12].mxu1 }
 0x269   :  { %v807_v35 = vpop.xlane.xlu0 %806  ;;  %v588_v33 = vsel %vm575_vm3, %v2407_v31, 0.0 }
 0x26a   :  { %2083 = vpow2.f32 %v701_v34  ;;  %v811_v36 = vsub.f32 %v2355_v46, %v807_v35  ;;  %589 = vadd.xlane.f32.xlu0 %v588_v33  ;;  %v2468_v35 = vpop.f32.mrb[13].mxu1 }
 0x26b   :  { %v810_v37 = vpop.xlane.xlu1 %809 }
 0x26c   :  { %v2412_v38 = vpop.eup %2079  ;;  %v813_v39 = vmul.f32 1.442695, %v811_v36  ;;  %v812_v40 = vsub.f32 %v2359_v49, %v810_v37  ;;  %v2471_v37 = vpop.f32.mrb[14].mxu1 }
 0x26d   :  { %v591_v41 = vsel %vm575_vm3, %v2412_v38, 0.0 }
 0x26e   :  { %2085 = vpow2.f32 %v813_v39  ;;  %v815_v43 = vmul.f32 1.442695, %v812_v40  ;;  %592 = vadd.xlane.f32.xlu1 %v591_v41  ;;  %v2473_v39 = vpop.f32.mrb[15].mxu1 }
 0x270   :  { %v2417_v44 = vpop.eup %2081  ;;  %2087 = vpow2.f32 %v815_v43 }
 0x271   :  { %v921_v45 = vpop.xlane.xlu0 %920  ;;  %v703_v46 = vsel %vm575_vm3, %v2417_v44, 0.0 }
 0x272   :  { %v925_v47 = vsub.f32 %v2363_v52, %v921_v45  ;;  %704 = vadd.xlane.f32.xlu0 %v703_v46 }
 0x273   :  { %v924_v48 = vpop.xlane.xlu1 %923 }
 0x274   :  { %v2422_v50 = vpop.eup %2083  ;;  %v927_v49 = vmul.f32 1.442695, %v925_v47  ;;  %v926_v51 = vsub.f32 %v2367_v55, %v924_v48 }
 0x275   :  { %v706_v53 = vsel %vm575_vm3, %v2422_v50, 0.0 }
 0x276   :  { %2089 = vpow2.f32 %v927_v49  ;;  %v929_v54 = vmul.f32 1.442695, %v926_v51  ;;  %707 = vadd.xlane.f32.xlu1 %v706_v53  ;;  %v2045_v49 = vld [vmem:[%s2675_s4 + $0x40] sm:$0xff]   ;;  %v2047_v53 = vld [vmem:[%s2675_s4 + $0x48] sm:$0xff]  }
 0x277   :  { %v2046_v51 = vld [vmem:[%s2675_s4] sm:$0xff]   ;;  %1875 = vmatprep.subr.bf16.mxu0 %v2045_v49 }
 0x278   :  { %v2427_v56 = vpop.eup %2085  ;;  %2091 = vpow2.f32 %v929_v54  ;;  %1876 = vmatpush3.bf16.msra.mxu0 %v2046_v51  ;;  %v2048_v54 = vld [vmem:[%s2675_s4 + $0x8] sm:$0xff]  }
 0x279   :  { %v1035_v57 = vpop.xlane.xlu0 %1034  ;;  %v817_v52 = vsel %vm575_vm3, %v2427_v56, 0.0  ;;  %1877 = vmatprep.subr.bf16.mxu0 %v2047_v53 }
 0x27a   :  { %v2431_v59 = vpop.eup %2087  ;;  %v1039_v60 = vsub.f32 %v2371_v58, %v1035_v57  ;;  %818 = vadd.xlane.f32.xlu0 %v817_v52  ;;  %v2049_v57 = vld [vmem:[%s2675_s4 + $0x50] sm:$0xff]  }
 0x27b   :  { %v1038_v62 = vpop.xlane.xlu1 %1037  ;;  %v820_v55 = vsel %vm575_vm3, %v2431_v59, 0.0  ;;  %v2050_v52 = vld [vmem:[%s2675_s4 + $0x10] sm:$0xff]  }
 0x27c   :  { %v1041_v63 = vmul.f32 1.442695, %v1039_v60  ;;  %v1040_v1 = vsub.f32 %v2375_v61, %v1038_v62  ;;  %821 = vadd.xlane.f32.xlu1 %v820_v55  ;;  %1878 = vmatpush3.bf16.msra.mxu0 %v2048_v54  ;;  %v2051_v60 = vld [vmem:[%s2675_s4 + $0x58] sm:$0xff]   ;;  %v2053_v55 = vld [vmem:[%s2675_s4 + $0x60] sm:$0xff]  }
 0x27d   :  { %1879 = vmatprep.subr.bf16.mxu0 %v2049_v57  ;;  %v2052_v62 = vld [vmem:[%s2675_s4 + $0x18] sm:$0xff]  }
 0x27e   :  { %2093 = vpow2.f32 %v1041_v63  ;;  %v1043_v2 = vmul.f32 1.442695, %v1040_v1  ;;  %v2055_v63 = vld [vmem:[%s2675_s4 + $0x20] sm:$0xff]  }
 0x280   :  { %v2437_v4 = vpop.eup %2089  ;;  %2095 = vpow2.f32 %v1043_v2  ;;  %1880 = vmatpush3.bf16.msra.mxu0 %v2050_v52 }
 0x281   :  { %v1149_v5 = vpop.xlane.xlu0 %1148  ;;  %v931_v7 = vsel %vm575_vm3, %v2437_v4, 0.0  ;;  %1881 = vmatprep.subr.bf16.mxu0 %v2051_v60 }
 0x282   :  { %v2441_v8 = vpop.eup %2091  ;;  %v1153_v58 = vsub.f32 %v2379_v0, %v1149_v5  ;;  %932 = vadd.xlane.f32.xlu0 %v931_v7 }
 0x283   :  { %v1152_v10 = vpop.xlane.xlu1 %1151  ;;  %v934_v11 = vsel %vm575_vm3, %v2441_v8, 0.0 }
 0x284   :  { %v1155_v61 = vmul.f32 1.442695, %v1153_v58  ;;  %v1154_v13 = vsub.f32 %v2383_v3, %v1152_v10  ;;  %935 = vadd.xlane.f32.xlu1 %v934_v11  ;;  %1882 = vmatpush3.bf16.msra.mxu0 %v2052_v62  ;;  %v649_v11 = vpack.c.bf16 %v2331_v29, %v2331_v29  ;;  %v763_v29 = vpack.c.bf16 %v2464_v28, %v2464_v28 }
 0x285   :  { %1883 = vmatprep.subr.bf16.mxu0 %v2053_v55 }
 0x286   :  { %2097 = vpow2.f32 %v1155_v61  ;;  %v1157_v14 = vmul.f32 1.442695, %v1154_v13 }
 0x288   :  { %v2447_v16 = vpop.eup %2093  ;;  %2099 = vpow2.f32 %v1157_v14  ;;  %1884 = vmatpush3.bf16.msra.mxu0 %v2055_v63 }
 0x289   :  { %v1263_v17 = vpop.xlane.xlu0 %1262  ;;  %v1045_v18 = vsel %vm575_vm3, %v2447_v16, 0.0 }
 0x28a   :  { %v2451_v19 = vpop.eup %2095  ;;  %v1267_v0 = vsub.f32 %v2387_v6, %v1263_v17  ;;  %1046 = vadd.xlane.f32.xlu0 %v1045_v18 }
 0x28b   :  { %v1266_v20 = vpop.xlane.xlu1 %1265  ;;  %v1048_v21 = vsel %vm575_vm3, %v2451_v19, 0.0 }
 0x28c   :  { %v1269_v3 = vmul.f32 1.442695, %v1267_v0  ;;  %v1268_v22 = vsub.f32 %v2391_v9, %v1266_v20  ;;  %1049 = vadd.xlane.f32.xlu1 %v1048_v21  ;;  %v718_v0 = vsel %vm602_vm2, %v649_v11, 0  ;;  %v2054_v11 = vld [vmem:[%s2675_s4 + $0xc0] sm:$0xff]  }
 0x28e   :  { %2101 = vpow2.f32 %v1269_v3  ;;  %v1271_v23 = vmul.f32 1.442695, %v1268_v22  ;;  %v832_v22 = vsel %vm602_vm2, %v763_v29, 0  ;;  %v2063_v29 = vld [vmem:[%s2675_s4 + $0x30] sm:$0xff]  }
 0x290   :  { %v2457_v24 = vpop.eup %2097  ;;  %2103 = vpow2.f32 %v1271_v23 }
 0x291   :  { %v1377_v25 = vpop.xlane.xlu0 %1376  ;;  %v1159_v26 = vsel %vm575_vm3, %v2457_v24, 0.0 }
 0x292   :  { %v2461_v27 = vpop.eup %2099  ;;  %v1381_v6 = vsub.f32 %v2395_v12, %v1377_v25  ;;  %1160 = vadd.xlane.f32.xlu0 %v1159_v26 }
 0x293   :  { %v1380_v34 = vpop.xlane.xlu1 %1379  ;;  %v1162_v9 = vsel %vm575_vm3, %v2461_v27, 0.0 }
 0x294   :  { %v1383_v33 = vmul.f32 1.442695, %v1381_v6  ;;  %v1382_v36 = vsub.f32 %v2399_v15, %v1380_v34  ;;  %1163 = vadd.xlane.f32.xlu1 %v1162_v9 }
 0x296   :  { %2105 = vpow2.f32 %v1383_v33  ;;  %v1385_v40 = vmul.f32 1.442695, %v1382_v36 }
 0x298   :  { %v2475_v12 = vpop.eup %2101  ;;  %2107 = vpow2.f32 %v1385_v40 }
 0x299   :  { %v1273_v41 = vsel %vm575_vm3, %v2475_v12, 0.0 }
 0x29a   :  { %v2479_v43 = vpop.eup %2103  ;;  %1274 = vadd.xlane.f32.xlu0 %v1273_v41 }
 0x29b   :  { %v1276_v45 = vsel %vm575_vm3, %v2479_v43, 0.0 }
 0x29c   :  { %1277 = vadd.xlane.f32.xlu1 %v1276_v45 }
 0x2a0   :  { %v2483_v15 = vpop.eup %2105 }
 0x2a1   :  { %v1387_v46 = vsel %vm575_vm3, %v2483_v15, 0.0 }
 0x2a2   :  { %v2487_v47 = vpop.eup %2107  ;;  %1388 = vadd.xlane.f32.xlu0 %v1387_v46 }
 0x2a3   :  { %v1390_v48 = vsel %vm575_vm3, %v2487_v47, 0.0 }
 0x2a4   :  { %1391 = vadd.xlane.f32.xlu1 %v1390_v48 }
 0x2f7   :  { %v590_v1 = vpop.xlane.xlu0 %589 }
 0x2f8   :  { %2109 = vrcp.f32 %v590_v1 }
 0x2fb   :  { %v593_v2 = vpop.xlane.xlu1 %592 }
 0x2fc   :  { %2111 = vrcp.f32 %v593_v2 }
 0x2ff   :  { %v705_v5 = vpop.xlane.xlu0 %704 }
 0x300   :  { %2113 = vrcp.f32 %v705_v5 }
 0x302   :  { %v2110_v58 = vpop.eup %2109 }
 0x303   :  { %v708_v7 = vpop.xlane.xlu1 %707  ;;  %v596_v61 = vmul.f32 %v2110_v58, %v2407_v31 }
 0x304   :  { %2115 = vrcp.f32 %v708_v7 }
 0x306   :  { %v2112_v10 = vpop.eup %2111 }
 0x307   :  { %v597_v13 = vmul.f32 %v2112_v10, %v2412_v38  ;;  %v819_v14 = vpop.xlane.xlu0 %818 }
 0x308   :  { %2117 = vrcp.f32 %v819_v14 }
 0x309   :  { %v822_v17 = vpop.xlane.xlu1 %821  ;;  %v598_v18 = vpack.c.bf16 %v597_v13, %v596_v61 }
 0x30a   :  { %2119 = vrcp.f32 %v822_v17  ;;  %v2114_v20 = vpop.eup %2113 }
 0x30b   :  { %1940 = vmatmul.mubr.msk.bf16.vlgmr.msra.gmra.mrb[16].mxu1 %vm575_vm3, %v598_v18  ;;  %v711_v38 = vmul.f32 %v2114_v20, %v2417_v44  ;;  %v2057_v18 = vld [vmem:[%s2675_s4 + $0x68] sm:$0xff]   ;;  %v2062_v20 = vld [vmem:[%s2675_s4 + $0xd0] sm:$0xff]  }
 0x30c   :  { %1950 = vmatpush3.bf16.msra.mxu1 %v718_v0  ;;  %1951 = vmatprep.mubr.msk.bf16.mxu1 %vm2167_vm1, %v2166_v42  ;;  %v2061_v0 = vld [vmem:[%s2675_s4 + $0x70] sm:$0xff]  }
 0x30d   :  { %1961 = vmatprep.subr.bf16.mxu1 %v2166_v42  ;;  %1885 = vmatprep.subr.bf16.mxu0 %v2057_v18 }
 0x30e   :  { %v2116_v31 = vpop.eup %2115 }
 0x30f   :  { %v712_v21 = vmul.f32 %v2116_v31, %v2422_v50  ;;  %v933_v3 = vpop.xlane.xlu0 %932  ;;  %v877_v50 = vpack.c.bf16 %v2468_v35, %v2468_v35  ;;  %v2064_v31 = vld [vmem:[%s2675_s4 + $0x90] sm:$0xff]  }
 0x310   :  { %2121 = vrcp.f32 %v933_v3  ;;  %v2067_v3 = vld [vmem:[%s2675_s4 + $0x38] sm:$0xff]  }
 0x311   :  { %v936_v23 = vpop.xlane.xlu1 %935  ;;  %v713_v25 = vpack.c.bf16 %v712_v21, %v711_v38  ;;  %v946_v40 = vsel %vm602_vm2, %v877_v50, 0  ;;  %v2065_v38 = vld [vmem:[%s2675_s4 + $0x78] sm:$0xff]  }
 0x312   :  { %2123 = vrcp.f32 %v936_v23  ;;  %v2118_v26 = vpop.eup %2117  ;;  %v2066_v21 = vld [vmem:[%s2675_s4 + $0xd8] sm:$0xff]   ;;  %v2069_v23 = vld [vmem:[%s2675_s4 + $0xe0] sm:$0xff]  }
 0x313   :  { %1952 = vmatmul.mubr.msk.bf16.vlgmr.msra.gmra.mrb[20].mxu1 %vm575_vm3, %v713_v25  ;;  %v825_v44 = vmul.f32 %v2118_v26, %v2427_v56  ;;  %v2070_v25 = vld [vmem:[%s2675_s4 + $0xa0] sm:$0xff]   ;;  %v2071_v26 = vld [vmem:[%s2675_s4 + $0xe8] sm:$0xff]   ;;  %v2075_v50 = vld [vmem:[%s2675_s4 + $0xf8] sm:$0xff]  }
 0x314   :  { %v2120_v6 = vpop.eup %2119  ;;  %1962 = vmatpush3.bf16.msra.mxu1 %v832_v22  ;;  %1963 = vmatprep.mubr.msk.bf16.mxu1 %vm2167_vm1, %v2166_v42  ;;  %v2068_v22 = vld [vmem:[%s2675_s4 + $0x98] sm:$0xff]  }
 0x315   :  { %v826_v28 = vmul.f32 %v2120_v6, %v2431_v59  ;;  %1973 = vmatprep.subr.bf16.mxu1 %v2166_v42  ;;  %v991_v59 = vpack.c.bf16 %v2333_v30, %v2333_v30  ;;  %v1105_v30 = vpack.c.bf16 %v2336_v32, %v2336_v32  ;;  %v1219_v32 = vpack.c.bf16 %v2471_v37, %v2471_v37  ;;  %v2072_v6 = vld [vmem:[%s2675_s4 + $0xa8] sm:$0xff]  }
 0x317   :  { %v1047_v34 = vpop.xlane.xlu0 %1046  ;;  %v827_v33 = vpack.c.bf16 %v826_v28, %v825_v44  ;;  %v1060_v51 = vsel %vm602_vm2, %v991_v59, 0  ;;  %v1174_v62 = vsel %vm602_vm2, %v1105_v30, 0  ;;  %v1288_v7 = vsel %vm602_vm2, %v1219_v32, 0  ;;  %v2073_v28 = vld [vmem:[%s2675_s4 + $0xf0] sm:$0xff]  }
 0x318   :  { %2125 = vrcp.f32 %v1047_v34  ;;  %v2074_v44 = vld [vmem:[%s2675_s4 + $0xb0] sm:$0xff]   ;;  %v2076_v34 = vld [vmem:[%s2675_s4 + $0xb8] sm:$0xff]  }
 0x319   :  { %v1050_v9 = vpop.xlane.xlu1 %1049 }
 0x31a   :  { %2127 = vrcp.f32 %v1050_v9  ;;  %v2122_v36 = vpop.eup %2121 }
 0x31b   :  { %1964 = vmatmul.mubr.msk.bf16.vlgmr.msra.gmra.mrb[24].mxu1 %vm575_vm3, %v827_v33  ;;  %v939_v35 = vmul.f32 %v2122_v36, %v2437_v4 }
 0x31c   :  { %v2124_v41 = vpop.eup %2123  ;;  %1974 = vmatpush3.bf16.msra.mxu1 %v946_v40  ;;  %1975 = vmatprep.mubr.msk.bf16.mxu1 %vm2167_vm1, %v2166_v42 }
 0x31d   :  { %v940_v56 = vmul.f32 %v2124_v41, %v2441_v8  ;;  %1985 = vmatprep.subr.bf16.mxu1 %v2166_v42 }
 0x31f   :  { %v1161_v45 = vpop.xlane.xlu0 %1160  ;;  %v941_v48 = vpack.c.bf16 %v940_v56, %v939_v35 }
 0x320   :  { %2129 = vrcp.f32 %v1161_v45 }
 0x321   :  { %v1164_v46 = vpop.xlane.xlu1 %1163 }
 0x322   :  { %2131 = vrcp.f32 %v1164_v46  ;;  %v2126_v49 = vpop.eup %2125 }
 0x323   :  { %1976 = vmatmul.mubr.msk.bf16.vlgmr.msra.gmra.mrb[28].mxu1 %vm575_vm3, %v941_v48  ;;  %v1053_v4 = vmul.f32 %v2126_v49, %v2447_v16 }
 0x324   :  { %v2128_v53 = vpop.eup %2127  ;;  %1986 = vmatpush3.bf16.msra.mxu1 %v1060_v51  ;;  %1987 = vmatprep.mubr.msk.bf16.mxu1 %vm2167_vm1, %v2166_v42 }
 0x325   :  { %v1054_v8 = vmul.f32 %v2128_v53, %v2451_v19  ;;  %1997 = vmatprep.subr.bf16.mxu1 %v2166_v42 }
 0x327   :  { %v1275_v54 = vpop.xlane.xlu0 %1274  ;;  %v1055_v52 = vpack.c.bf16 %v1054_v8, %v1053_v4 }
 0x328   :  { %2133 = vrcp.f32 %v1275_v54 }
 0x329   :  { %v1278_v57 = vpop.xlane.xlu1 %1277 }
 0x32a   :  { %2135 = vrcp.f32 %v1278_v57  ;;  %v2130_v60 = vpop.eup %2129 }
 0x32b   :  { %1988 = vmatmul.mubr.msk.bf16.vlgmr.msra.gmra.mrb[32].mxu1 %vm575_vm3, %v1055_v52  ;;  %v1167_v16 = vmul.f32 %v2130_v60, %v2457_v24  ;;  %v1333_v24 = vpack.c.bf16 %v2473_v39, %v2473_v39 }
 0x32c   :  { %v2132_v55 = vpop.eup %2131  ;;  %1998 = vmatpush3.bf16.msra.mxu1 %v1174_v62  ;;  %1999 = vmatprep.mubr.msk.bf16.mxu1 %vm2167_vm1, %v2166_v42 }
 0x32d   :  { %v1168_v19 = vmul.f32 %v2132_v55, %v2461_v27  ;;  %2009 = vmatprep.subr.bf16.mxu1 %v2166_v42  ;;  %v1402_v13 = vsel %vm602_vm2, %v1333_v24, 0 }
 0x32f   :  { %v1389_v63 = vpop.xlane.xlu0 %1388  ;;  %v1169_v2 = vpack.c.bf16 %v1168_v19, %v1167_v16 }
 0x330   :  { %2137 = vrcp.f32 %v1389_v63 }
 0x331   :  { %v1392_v1 = vpop.xlane.xlu1 %1391 }
 0x332   :  { %2139 = vrcp.f32 %v1392_v1  ;;  %v2134_v5 = vpop.eup %2133 }
 0x333   :  { %2000 = vmatmul.mubr.msk.bf16.vlgmr.msra.gmra.mrb[36].mxu1 %vm575_vm3, %v1169_v2  ;;  %v1281_v37 = vmul.f32 %v2134_v5, %v2475_v12  ;;  %v2056_v12 = vld [vmem:[%s2675_s4 + $0x80] sm:$0xff]  }
 0x334   :  { %v2136_v58 = vpop.eup %2135  ;;  %2010 = vmatpush3.bf16.msra.mxu1 %v1288_v7  ;;  %2011 = vmatprep.mubr.msk.bf16.mxu1 %vm2167_vm1, %v2166_v42 }
 0x335   :  { %v1282_v27 = vmul.f32 %v2136_v58, %v2479_v43  ;;  %2021 = vmatprep.subr.bf16.mxu1 %v2166_v42 }
 0x337   :  { %v1283_v10 = vpack.c.bf16 %v1282_v27, %v1281_v37 }
 0x33a   :  { %v2138_v61 = vpop.eup %2137 }
 0x33b   :  { %2012 = vmatmul.mubr.msk.bf16.vlgmr.msra.gmra.mrb[40].mxu1 %vm575_vm3, %v1283_v10  ;;  %v1395_v39 = vmul.f32 %v2138_v61, %v2483_v15  ;;  %v2059_v15 = vld [vmem:[%s2675_s4 + $0x28] sm:$0xff]  }
 0x33c   :  { %v2140_v14 = vpop.eup %2139  ;;  %2022 = vmatpush3.bf16.msra.mxu1 %v1402_v13  ;;  %2023 = vmatprep.mubr.msk.bf16.mxu1 %vm2167_vm1, %v2166_v42  ;;  %v2058_v42 = vld [vmem:[%s2675_s4 + $0xc8] sm:$0xff]  }
 0x33d   :  { %v1396_v43 = vmul.f32 %v2140_v14, %v2487_v47  ;;  %1903 = vmatprep.subr.bf16.mxu1 %v2054_v11  ;;  %v2060_v47 = vld [vmem:[%s2675_s4 + $0x88] sm:$0xff]   ;;  %1886 = vmatpush3.bf16.msra.mxu0 %v2059_v15  ;;  %v1810_v15 = vld [vmem:[%s2676_s5] ss:$0 sm:$0xff]  ;;  %s2168_s5 = smov [#allocation2]  }
 0x33e   :  { %1887 = vmatprep.subr.bf16.mxu0 %v2061_v0  ;;  %s1759_s12 = sshll.u32 %s2168_s5, 4  ;;  %s1760_s12 = int_to_ptr.vmem [resolvable:$true] %s1759_s12 }
 0x33f   :  { %v1397_v17 = vpack.c.bf16 %v1396_v43, %v1395_v39  ;;  %s2141_s13 = scalar_lea.vmem %s1760_s12, 512  ;;  %p2146_p1 = scmp.lt.s32.totalorder %s1760_s12, %s1760_s12 }
 0x340   :  { %p2142_p0 = scmp.ne.s32.totalorder %s1760_s12, %s2141_s13  ;;  %p2147_p2 = scmp.lt.s32.totalorder %s2141_s13, %s2141_s13 }
 0x341   :  { %1888 = vmatpush3.bf16.msra.mxu0 %v2063_v29 }
 0x342   :  { %1889 = vmatprep.subr.bf16.mxu0 %v2065_v38  ;;  %p2148_p3 = por %p2147_p2, %p2146_p1 }
 0x343   :  { %2024 = vmatmul.mubr.msk.bf16.vlgmr.msra.gmra.mrb[44].mxu1 %vm575_vm3, %v1397_v17 }
 0x344   :  { %1904 = vmatpush3.bf16.msra.mxu1 %v2056_v12  ;;  %p2149_p4 = pnand %p2148_p3, %p2142_p0 }
 0x345   :  { %1905 = vmatprep.subr.bf16.mxu1 %v2058_v42  ;;  %1890 = vmatpush3.bf16.msra.mxu0 %v2067_v3 }
 0x348   :  { %1906 = vmatpush3.bf16.msra.mxu1 %v2060_v47 }
 0x349   :  { %1907 = vmatprep.subr.bf16.mxu1 %v2062_v20 }
 0x34c   :  { %1908 = vmatpush3.bf16.msra.mxu1 %v2064_v31 }
 0x34d   :  { %1909 = vmatprep.subr.bf16.mxu1 %v2066_v21 }
 0x350   :  { %1910 = vmatpush3.bf16.msra.mxu1 %v2068_v22 }
 0x351   :  { %1911 = vmatprep.subr.bf16.mxu1 %v2069_v23 }
 0x354   :  { %1912 = vmatpush3.bf16.msra.mxu1 %v2070_v25 }
 0x355   :  { %1913 = vmatprep.subr.bf16.mxu1 %v2071_v26 }
 0x358   :  { %1914 = vmatpush3.bf16.msra.mxu1 %v2072_v6 }
 0x359   :  { %1915 = vmatprep.subr.bf16.mxu1 %v2073_v28 }
 0x35c   :  { %1916 = vmatpush3.bf16.msra.mxu1 %v2074_v44 }
 0x35d   :  { %1917 = vmatprep.subr.bf16.mxu1 %v2075_v50 }
 0x360   :  { %1918 = vmatpush3.bf16.msra.mxu1 %v2076_v34 }
 0x3de   :  { %v640_v9 = vpop.f32.mrb[16].mxu1 }
 0x3df   :  { %v1941_v33 = vpop.f32.mrb[17].mxu1 }
 0x3e0   :  { %v643_v36 = vpop.f32.mrb[18].mxu1 }
 0x3e1   :  { %v1445_v40 = vpack.c.bf16 %v643_v36, %v640_v9  ;;  %v1942_v41 = vpop.f32.mrb[19].mxu1 }
 0x3e6   :  { %v754_v56 = vpop.f32.mrb[20].mxu1 }
 0x3e7   :  { %v1953_v59 = vpop.f32.mrb[21].mxu1 }
 0x3e8   :  { %v757_v35 = vpop.f32.mrb[22].mxu1 }
 0x3e9   :  { %v1446_v45 = vpack.c.bf16 %v757_v35, %v754_v56  ;;  %v1954_v46 = vpop.f32.mrb[23].mxu1 }
 0x3eb   :  { %1683 = vmatprep.mubr.bf16.mxu0 %v1446_v45 }
 0x3ec   :  { %1684 = vmatmul.mubr.bf16.vlgmr.msra.gmra.mrb[48].mxu0 %v1445_v40 }
 0x3ee   :  { %v868_v48 = vpop.f32.mrb[24].mxu1 }
 0x3ef   :  { %v1965_v49 = vpop.f32.mrb[25].mxu1 }
 0x3f0   :  { %v871_v51 = vpop.f32.mrb[26].mxu1 }
 0x3f1   :  { %v1447_v53 = vpack.c.bf16 %v871_v51, %v868_v48  ;;  %v1966_v8 = vpop.f32.mrb[27].mxu1 }
 0x3f6   :  { %v982_v30 = vpop.f32.mrb[28].mxu1 }
 0x3f7   :  { %v1977_v4 = vpop.f32.mrb[29].mxu1 }
 0x3f8   :  { %v985_v54 = vpop.f32.mrb[30].mxu1 }
 0x3f9   :  { %v1448_v57 = vpack.c.bf16 %v985_v54, %v982_v30  ;;  %v1978_v52 = vpop.f32.mrb[31].mxu1 }
 0x3fb   :  { %1732 = vmatprep.mubr.bf16.mxu1 %v1448_v57 }
 0x3fc   :  { %1733 = vmatmul.mubr.bf16.vlgmr.msra.gmra.mrb[48].mxu1 %v1447_v53 }
 0x3fe   :  { %v1096_v60 = vpop.f32.mrb[32].mxu1 }
 0x3ff   :  { %v1989_v62 = vpop.f32.mrb[33].mxu1 }
 0x400   :  { %v1099_v55 = vpop.f32.mrb[34].mxu1 }
 0x401   :  { %v1449_v19 = vpack.c.bf16 %v1099_v55, %v1096_v60  ;;  %v1990_v32 = vpop.f32.mrb[35].mxu1 }
 0x406   :  { %v1210_v16 = vpop.f32.mrb[36].mxu1 }
 0x407   :  { %v2001_v63 = vpop.f32.mrb[37].mxu1 }
 0x408   :  { %v1213_v1 = vpop.f32.mrb[38].mxu1 }
 0x409   :  { %v1450_v2 = vpack.c.bf16 %v1213_v1, %v1210_v16  ;;  %v2002_v5 = vpop.f32.mrb[39].mxu1 }
 0x40b   :  { %1691 = vmatprep.mubr.bf16.mxu0 %v1450_v2 }
 0x40c   :  { %1692 = vmatmul.mubr.bf16.gmra.mrb[52].mxu0 %v1449_v19 }
 0x40e   :  { %v1324_v7 = vpop.f32.mrb[40].mxu1 }
 0x40f   :  { %v2013_v58 = vpop.f32.mrb[41].mxu1 }
 0x410   :  { %v1327_v27 = vpop.f32.mrb[42].mxu1 }
 0x411   :  { %v1451_v24 = vpack.c.bf16 %v1327_v27, %v1324_v7  ;;  %v2014_v37 = vpop.f32.mrb[43].mxu1 }
 0x416   :  { %v1438_v10 = vpop.f32.mrb[44].mxu1 }
 0x417   :  { %v2025_v11 = vpop.f32.mrb[45].mxu1 }
 0x418   :  { %v1441_v61 = vpop.f32.mrb[46].mxu1 }
 0x419   :  { %v1452_v13 = vpack.c.bf16 %v1441_v61, %v1438_v10  ;;  %v2026_v14 = vpop.f32.mrb[47].mxu1 }
 0x41b   :  { %1740 = vmatprep.mubr.bf16.mxu1 %v1452_v13 }
 0x41c   :  { %1741 = vmatmul.mubr.bf16.gmra.mrb[52].mxu1 %v1451_v24 }
 0x4bf   :  { %v1891_v43 = vpop.f32.mrb[48].mxu0 }
 0x4c0   :  { %v1892_v39 = vpop.f32.mrb[49].mxu0 }
 0x4c1   :  { %v1893_v12 = vadd.f32 %v1892_v39, %v1891_v43  ;;  %v1894_v17 = vpop.f32.mrb[50].mxu0 }
 0x4c2   :  { %v1895_v18 = vpop.f32.mrb[51].mxu0 }
 0x4c3   :  { %v1896_v42 = vadd.f32 %v1895_v18, %v1894_v17  ;;  %v1686_v20 = vadd.f32 %v1893_v12, %v1810_v15 }
 0x4c5   :  { %v1689_v21 = vadd.f32 %v1896_v42, %v1810_v15 }
 0x4cf   :  { %v1919_v47 = vpop.f32.mrb[48].mxu1 }
 0x4d0   :  { %v1920_v0 = vpop.f32.mrb[49].mxu1 }
 0x4d1   :  { %v1921_v29 = vadd.f32 %v1920_v0, %v1919_v47  ;;  %v1922_v31 = vpop.f32.mrb[50].mxu1 }
 0x4d2   :  { %v1923_v38 = vpop.f32.mrb[51].mxu1 }
 0x4d3   :  { %v1735_v3 = vadd.f32 %v1921_v29, %v1686_v20  ;;  %v1924_v22 = vadd.f32 %v1923_v38, %v1922_v31 }
 0x4d5   :  { %1749 = vst.msk [vmem:[#allocation2] sm:$0xff] %vm163_vm0, %v1735_v3  ;;  %v1738_v23 = vadd.f32 %v1924_v22, %v1689_v21 }
 0x4d7   :  { %1750 = vst.msk [vmem:[#allocation2 + $0x8] sm:$0xff] %vm163_vm0, %v1738_v23 }
 0x4df   :  { %v1897_v25 = vpop.f32.mrb[52].mxu0 }
 0x4e0   :  { %v1898_v26 = vpop.f32.mrb[53].mxu0 }
 0x4e1   :  { %v1899_v6 = vadd.f32 %v1898_v26, %v1897_v25  ;;  %v1900_v28 = vpop.f32.mrb[54].mxu0 }
 0x4e2   :  { %v1901_v44 = vpop.f32.mrb[55].mxu0 }
 0x4e3   :  { %v1902_v50 = vadd.f32 %v1901_v44, %v1900_v28  ;;  %v1694_v33 = vadd.f32 %v1899_v6, %v1810_v15 }
 0x4e5   :  { %v1697_v56 = vadd.f32 %v1902_v50, %v1810_v15 }
 0x4ef   :  { %v1925_v34 = vpop.f32.mrb[52].mxu1 }
 0x4f0   :  { %v1926_v9 = vpop.f32.mrb[53].mxu1 }
 0x4f1   :  { %v1927_v36 = vadd.f32 %v1926_v9, %v1925_v34  ;;  %v1928_v40 = vpop.f32.mrb[54].mxu1 }
 0x4f2   :  { %v1929_v41 = vpop.f32.mrb[55].mxu1 }
 0x4f3   :  { %v1743_v59 = vadd.f32 %v1927_v36, %v1694_v33  ;;  %v1930_v35 = vadd.f32 %v1929_v41, %v1928_v40 }
 0x4f5   :  { %1752 = vst.msk [vmem:[#allocation2 + $0x10] sm:$0xff] %vm163_vm0, %v1743_v59  ;;  %v1746_v45 = vadd.f32 %v1930_v35, %v1697_v56 }
 0x4f7   :  { %1753 = vst.msk [vmem:[#allocation2 + $0x18] sm:$0xff] %vm163_vm0, %v1746_v45 }
 0x4f8   :  { %2152 = shalt.err (!%p2149_p4)
}
 0x4f9   :  { %s2153_s16 = scalar_lea.hbm %s2677_s6, 512 }
 0x4fa   :  { %p2154_p5 = scmp.ne.s32.totalorder %s2677_s6, %s2153_s16  ;;  %p2157_p6 = scmp.lt.u32.totalorder %s2153_s16, %s2677_s6 }
 0x4fc   :  { %p2159_p7 = pnand %p2157_p6, %p2154_p5 }
 0x4fe   :  { %2162 = shalt.err (!%p2159_p7)
}
 0x4ff   :  { %s2169_s20 = smov 128   ;;  %s2170_s21 = smov 8  }
 0x500   :  { %1765 = dma.vmem_to_hbm [thread:$0]  %s1760_s12, 512, %s2677_s6, [#allocation3], %s2169_s20, %s2169_s20, %s2170_s21  }
 0x501   :  { %2163 = dma.done.wait [#allocation3], 512  }
 0x502   :  { %2164 = vsyncadd [#allocation3], 4294966784 }
 0x503   :  { %1769 = vsyncpa [#allocation3], 1 }

</bundles_post_ra>
